<compile_context>
chip_gen: v5e
topology: v5e:2x2
jax: 0.10.0
libtpu: 0.0.40
codegen_flags: <defaults>
</compile_context>

<pallas_src>
import functools

import jax
import jax.numpy as jnp
from jax.experimental import pallas as pl
from jax.experimental.pallas import tpu as pltpu


def _conv_bn_relu_kernel(x_ref, w_ref, sb_ref, o_ref, *, nb, th, wout_p, kh, kwcin):
    """One (batch-block, row-block) grid step.

    x_ref : (nb, Hp, Wout_p, kw*Cin)  bf16  width-unrolled padded rows of nb images
    w_ref : (kh, kw*Cin, Cout)        bf16  per-ky weight matrices
    sb_ref: (2, Cout)                 f32   row 0 = BN scale, row 1 = BN bias
    o_ref : (nb, th*Wout_p, Cout)     bf16  output rows of this row block
    """
    cout = o_ref.shape[2]
    row0 = pl.program_id(1) * th
    m = nb * th * wout_p

    acc = None
    for ky in range(kh):
        # Outer-dim slice + free reshape (Wout_p % 8 == 0): no relayout copy per tap.
        lhs = x_ref[:, pl.ds(row0 + ky, th), :, :].reshape(m, kwcin)
        part = jnp.dot(lhs, w_ref[ky], preferred_element_type=jnp.float32)
        acc = part if acc is None else acc + part   # in-place MRB accumulate on v7x

    y = acc * sb_ref[0:1, :] + sb_ref[1:2, :]       # folded BatchNorm (eval mode)
    y = jnp.maximum(y, 0.0)                         # ReLU
    o_ref[...] = y.reshape(nb, th * wout_p, cout).astype(o_ref.dtype)


def _largest_divisor_tile(n, unit, target):
    """Largest divisor t of n with t*unit <= target (falls back to 1)."""
    best = 1
    for t in range(1, n + 1):
        if n % t == 0 and t * unit <= target:
            best = t
    return best


def _target_pixels():
    """Output pixels per grid step: bigger tiles on 128-MiB-VMEM parts (v5e/v6e),
    conservative on v7x (64 MiB physical)."""
    try:
        vmem_bytes = pltpu.get_tpu_info().vmem_capacity_bytes
    except Exception:
        return 2048
    return 4096 if vmem_bytes >= 96 * 2 ** 20 else 2048


@functools.partial(jax.jit, static_argnames=("stride", "padding"))
def basic_conv2d_forward(x, weight, gamma, beta, running_mean, running_var,
                         eps=1e-5, stride=1, padding=1):
    """x: (N, Cin, H, W) NCHW; weight: (Cout, Cin, kh, kw); conv bias=False."""
    assert stride == 1, "kernel written for stride=1"
    N, Cin, H, W = x.shape
    Cout, _, kh, kw = weight.shape
    Hp = H + 2 * padding
    Hout = Hp - kh + 1
    Wout = W + 2 * padding - kw + 1
    wout_p = ((Wout + 7) // 8) * 8           # sublane-friendly output width
    wp2 = wout_p + kw - 1                    # padded input width actually needed
    kwcin = kw * Cin

    # ---- glue (plain JAX): layout, halo padding, width unroll, parameter folding ----
    x_nhwc = jnp.transpose(x, (0, 2, 3, 1))
    x_pad = jnp.pad(
        x_nhwc,
        ((0, 0), (padding, padding), (padding, wp2 - padding - W), (0, 0)),
    ).astype(jnp.bfloat16)                                    # (N, Hp, wp2, Cin)
    # width-unrolled input: xw[n, h, c, kx*Cin + ci] = x_pad[n, h, c + kx, ci]
    xw = jnp.concatenate(
        [x_pad[:, :, kx:kx + wout_p, :] for kx in range(kw)], axis=-1
    )                                                          # (N, Hp, wout_p, kw*Cin)

    # per-ky weight matrices: w_ky[ky, kx*Cin + ci, o] = weight[o, ci, ky, kx]
    w_ky = jnp.transpose(weight, (2, 3, 1, 0)).reshape(kh, kwcin, Cout)
    w_ky = w_ky.astype(jnp.bfloat16)

    inv_std = jax.lax.rsqrt(running_var.astype(jnp.float32) + eps)
    scale = gamma.astype(jnp.float32) * inv_std
    bias = beta.astype(jnp.float32) - running_mean.astype(jnp.float32) * scale
    sb = jnp.stack([scale, bias], axis=0)                      # (2, Cout) f32

    # ---- tiling: row tile th (divides Hout), batch tile nb (divides N) ----
    target = _target_pixels()
    th = _largest_divisor_tile(Hout, wout_p, target)
    nb = _largest_divisor_tile(N, th * wout_p, target)
    grid = (N // nb, Hout // th)

    # ---- VMEM budget from actual buffer sizes (headroom for v7x's 64 MiB) ----
    in_bytes = nb * Hp * wout_p * kwcin * 2             # bf16, double-buffered
    w_bytes = kh * kwcin * Cout * 2                     # bf16, single-buffered
    sb_bytes = 2 * Cout * 4                             # f32,  single-buffered
    out_bytes = nb * th * wout_p * Cout * 2             # bf16, double-buffered
    acc_bytes = nb * th * wout_p * max(Cout, 128) * 4   # f32 matmul/epilogue temporaries
    est_vmem = 2 * in_bytes + w_bytes + sb_bytes + 2 * out_bytes + 3 * acc_bytes
    vmem_limit = int(min(36 * 2 ** 20, max(8 * 2 ** 20, 2 * est_vmem)))

    cost = pl.CostEstimate(
        flops=2 * N * Hout * Wout * kh * kw * Cin * Cout,      # useful work only
        transcendentals=0,
        bytes_accessed=(N * Hp * wout_p * kwcin * 2 + kh * kwcin * Cout * 2
                        + 2 * Cout * 4 + N * Hout * wout_p * Cout * 2),
    )

    kernel = functools.partial(_conv_bn_relu_kernel, nb=nb, th=th, wout_p=wout_p,
                               kh=kh, kwcin=kwcin)

    out_flat = pl.pallas_call(
        kernel,
        out_shape=jax.ShapeDtypeStruct((N, Hout * wout_p, Cout), jnp.bfloat16),
        grid_spec=pltpu.PrefetchScalarGridSpec(
            num_scalar_prefetch=0,
            grid=grid,
            in_specs=[
                pl.BlockSpec((nb, Hp, wout_p, kwcin), lambda b, r: (b, 0, 0, 0)),
                pl.BlockSpec((kh, kwcin, Cout), lambda b, r: (0, 0, 0),
                             pipeline_mode=pl.Buffered(1)),
                pl.BlockSpec((2, Cout), lambda b, r: (0, 0),
                             pipeline_mode=pl.Buffered(1)),
            ],
            out_specs=pl.BlockSpec((nb, th * wout_p, Cout), lambda b, r: (b, r, 0)),
        ),
        compiler_params=pltpu.CompilerParams(
            dimension_semantics=("parallel", "parallel"),
            vmem_limit_bytes=vmem_limit),
        cost_estimate=cost,
    )(xw, w_ky, sb)

    # drop width padding, back to NCHW f32 at the boundary
    out = out_flat.reshape(N, Hout, wout_p, Cout)[:, :, :Wout, :]
    return jnp.transpose(out, (0, 3, 1, 2)).astype(x.dtype)


def _reference(x, weight, gamma, beta, running_mean, running_var,
               eps=1e-5, padding=1, quantize_bf16=True):
    """Pure-JAX conv -> BN(eval) -> ReLU reference.  quantize_bf16=True mirrors the
    kernel's bf16 operand quantization (math stays f32 either way)."""
    xr, wr = x, weight
    if quantize_bf16:
        xr = xr.astype(jnp.bfloat16).astype(jnp.float32)
        wr = wr.astype(jnp.bfloat16).astype(jnp.float32)
    y = jax.lax.conv_general_dilated(
        xr, wr, window_strides=(1, 1),
        padding=[(padding, padding), (padding, padding)],
        dimension_numbers=("NCHW", "OIHW", "NCHW"))
    inv_std = jax.lax.rsqrt(running_var + eps)
    scale = (gamma * inv_std)[None, :, None, None]
    bias = (beta - running_mean * gamma * inv_std)[None, :, None, None]
    return jnp.maximum(y * scale + bias, 0.0)


if __name__ == "__main__":
    key = jax.random.PRNGKey(0)
    k_x, k_w, k_g, k_b, k_m, k_v = jax.random.split(key, 6)

    # small shapes implied by the module: batch=2, Cin=4, spatial=16, Cout=8, 3x3 conv
    N, Cin, H, W = 2, 4, 16, 16
    Cout, kh, kw = 8, 3, 3

    x = jax.random.normal(k_x, (N, Cin, H, W), dtype=jnp.float32)
    weight = jax.random.normal(k_w, (Cout, Cin, kh, kw), dtype=jnp.float32) * 0.1
    gamma = jax.random.normal(k_g, (Cout,), dtype=jnp.float32) * 0.1 + 1.0
    beta = jax.random.normal(k_b, (Cout,), dtype=jnp.float32) * 0.1
    running_mean = jax.random.normal(k_m, (Cout,), dtype=jnp.float32) * 0.1
    running_var = jnp.abs(jax.random.normal(k_v, (Cout,), dtype=jnp.float32)) * 0.5 + 0.5

    out = basic_conv2d_forward(x, weight, gamma, beta, running_mean, running_var)
    out = jax.block_until_ready(out)
    assert out.shape == (N, Cout, H, W)

    # primary check: same bf16 operand quantization as the kernel (only remaining error
    # is the bf16 output cast); secondary check: fidelity vs the pure-f32 module math.
    ref_q = _reference(x, weight, gamma, beta, running_mean, running_var,
                       quantize_bf16=True)
    ref_f = _reference(x, weight, gamma, beta, running_mean, running_var,
                       quantize_bf16=False)
    assert jnp.allclose(out, ref_q, atol=1e-2, rtol=1e-2), "mismatch vs bf16-quantized ref"
    assert jnp.allclose(out, ref_f, atol=3e-2, rtol=3e-2), "mismatch vs f32 reference"

    print("KERNEL_OK")
</pallas_src>

<mosaic_0001>
module attributes {stable_mosaic.version = 11 : i64} {
  func.func @_conv_bn_relu_kernel(%arg0: i32, %arg1: i32, %arg2: memref<2x18x16x12xbf16, #tpu.memory_space<vmem>>, %arg3: memref<3x12x8xbf16, #tpu.memory_space<vmem>>, %arg4: memref<2x8xf32, #tpu.memory_space<vmem>>, %arg5: memref<2x256x8xbf16, #tpu.memory_space<vmem>>) attributes {dimension_semantics = [#tpu.dimension_semantics<parallel>, #tpu.dimension_semantics<parallel>], iteration_bounds = array<i64: 1, 1>, scalar_prefetch = 0 : i64, scratch_operands = 0 : i64, tpu.core_type = #tpu.core_type<tc>, window_params = [{transform_indices = @transform_0, window_bounds = array<i64: 2, 18, 16, 12>}, {pipeline_mode = #tpu.pipeline_mode<synchronous>, transform_indices = @transform_1, window_bounds = array<i64: 3, 12, 8>}, {pipeline_mode = #tpu.pipeline_mode<synchronous>, transform_indices = @transform_2, window_bounds = array<i64: 2, 8>}, {transform_indices = @transform_3, window_bounds = array<i64: 2, 256, 8>}]} {
    %c16_i32 = arith.constant 16 : i32
    %0 = arith.muli %arg1, %c16_i32 : i32
    %c0_i32 = arith.constant 0 : i32
    %1 = arith.addi %0, %c0_i32 : i32
    %c0 = arith.constant 0 : index
    %2 = arith.index_cast %1 : i32 to index
    %c0_0 = arith.constant 0 : index
    %c0_1 = arith.constant 0 : index
    %3 = vector.load %arg2[%c0, %2, %c0_0, %c0_1] : memref<2x18x16x12xbf16, #tpu.memory_space<vmem>>, vector<2x16x16x12xbf16>
    %4 = vector.shape_cast %3 : vector<2x16x16x12xbf16> to vector<512x12xbf16>
    %c0_2 = arith.constant 0 : index
    %c0_3 = arith.constant 0 : index
    %c0_4 = arith.constant 0 : index
    %5 = vector.load %arg3[%c0_2, %c0_3, %c0_4] : memref<3x12x8xbf16, #tpu.memory_space<vmem>>, vector<1x12x8xbf16>
    %6 = vector.shape_cast %5 : vector<1x12x8xbf16> to vector<12x8xbf16>
    %cst = arith.constant dense<0.000000e+00> : vector<512x8xf32>
    %7 = tpu.matmul %4, %6, %cst {dimension_numbers = #tpu.dot_dimension_numbers<[1], [0], [0], [1], [0, 0, 1, 1], [], []>} : vector<512x12xbf16>, vector<12x8xbf16>, vector<512x8xf32> -> vector<512x8xf32>
    %c1_i32 = arith.constant 1 : i32
    %8 = arith.addi %0, %c1_i32 : i32
    %c0_5 = arith.constant 0 : index
    %9 = arith.index_cast %8 : i32 to index
    %c0_6 = arith.constant 0 : index
    %c0_7 = arith.constant 0 : index
    %10 = vector.load %arg2[%c0_5, %9, %c0_6, %c0_7] : memref<2x18x16x12xbf16, #tpu.memory_space<vmem>>, vector<2x16x16x12xbf16>
    %11 = vector.shape_cast %10 : vector<2x16x16x12xbf16> to vector<512x12xbf16>
    %c1 = arith.constant 1 : index
    %c0_8 = arith.constant 0 : index
    %c0_9 = arith.constant 0 : index
    %12 = vector.load %arg3[%c1, %c0_8, %c0_9] : memref<3x12x8xbf16, #tpu.memory_space<vmem>>, vector<1x12x8xbf16>
    %13 = vector.shape_cast %12 : vector<1x12x8xbf16> to vector<12x8xbf16>
    %cst_10 = arith.constant dense<0.000000e+00> : vector<512x8xf32>
    %14 = tpu.matmul %11, %13, %cst_10 {dimension_numbers = #tpu.dot_dimension_numbers<[1], [0], [0], [1], [0, 0, 1, 1], [], []>} : vector<512x12xbf16>, vector<12x8xbf16>, vector<512x8xf32> -> vector<512x8xf32>
    %15 = arith.addf %7, %14 : vector<512x8xf32>
    %c2_i32 = arith.constant 2 : i32
    %16 = arith.addi %0, %c2_i32 : i32
    %c0_11 = arith.constant 0 : index
    %17 = arith.index_cast %16 : i32 to index
    %c0_12 = arith.constant 0 : index
    %c0_13 = arith.constant 0 : index
    %18 = vector.load %arg2[%c0_11, %17, %c0_12, %c0_13] : memref<2x18x16x12xbf16, #tpu.memory_space<vmem>>, vector<2x16x16x12xbf16>
    %19 = vector.shape_cast %18 : vector<2x16x16x12xbf16> to vector<512x12xbf16>
    %c2 = arith.constant 2 : index
    %c0_14 = arith.constant 0 : index
    %c0_15 = arith.constant 0 : index
    %20 = vector.load %arg3[%c2, %c0_14, %c0_15] : memref<3x12x8xbf16, #tpu.memory_space<vmem>>, vector<1x12x8xbf16>
    %21 = vector.shape_cast %20 : vector<1x12x8xbf16> to vector<12x8xbf16>
    %cst_16 = arith.constant dense<0.000000e+00> : vector<512x8xf32>
    %22 = tpu.matmul %19, %21, %cst_16 {dimension_numbers = #tpu.dot_dimension_numbers<[1], [0], [0], [1], [0, 0, 1, 1], [], []>} : vector<512x12xbf16>, vector<12x8xbf16>, vector<512x8xf32> -> vector<512x8xf32>
    %23 = arith.addf %15, %22 : vector<512x8xf32>
    %c0_17 = arith.constant 0 : index
    %c0_18 = arith.constant 0 : index
    %24 = vector.load %arg4[%c0_17, %c0_18] : memref<2x8xf32, #tpu.memory_space<vmem>>, vector<1x8xf32>
    %25 = vector.broadcast %24 : vector<1x8xf32> to vector<512x8xf32>
    %26 = arith.mulf %23, %25 : vector<512x8xf32>
    %c1_19 = arith.constant 1 : index
    %c0_20 = arith.constant 0 : index
    %27 = vector.load %arg4[%c1_19, %c0_20] : memref<2x8xf32, #tpu.memory_space<vmem>>, vector<1x8xf32>
    %28 = vector.broadcast %27 : vector<1x8xf32> to vector<512x8xf32>
    %29 = arith.addf %26, %28 : vector<512x8xf32>
    %cst_21 = arith.constant 0.000000e+00 : f32
    %30 = vector.broadcast %cst_21 : f32 to vector<512x8xf32>
    %31 = arith.maximumf %29, %30 : vector<512x8xf32>
    %32 = vector.shape_cast %31 : vector<512x8xf32> to vector<2x256x8xf32>
    %33 = arith.truncf %32 : vector<2x256x8xf32> to vector<2x256x8xbf16>
    %c0_22 = arith.constant 0 : index
    %c0_23 = arith.constant 0 : index
    %c0_24 = arith.constant 0 : index
    %34 = vector.load %arg5[%c0_22, %c0_23, %c0_24] : memref<2x256x8xbf16, #tpu.memory_space<vmem>>, vector<2x256x8xbf16>
    tpu.vector_store %arg5[%c0_22, %c0_23, %c0_24], %33 {strides = array<i32>} : memref<2x256x8xbf16, #tpu.memory_space<vmem>>, vector<2x256x8xbf16>,
    return
  }
  func.func @transform_0(%arg0: i32, %arg1: i32) -> (i32, i32, i32, i32) {
    %c0_i32 = arith.constant 0 : i32
    %c0_i32_0 = arith.constant 0 : i32
    %c0_i32_1 = arith.constant 0 : i32
    %c0_i32_2 = arith.constant 0 : i32
    return %arg0, %c0_i32, %c0_i32_0, %c0_i32_1 : i32, i32, i32, i32
  }
  func.func @transform_1(%arg0: i32, %arg1: i32) -> (i32, i32, i32) {
    %c0_i32 = arith.constant 0 : i32
    %c0_i32_0 = arith.constant 0 : i32
    %c0_i32_1 = arith.constant 0 : i32
    %c0_i32_2 = arith.constant 0 : i32
    return %c0_i32, %c0_i32_0, %c0_i32_1 : i32, i32, i32
  }
  func.func @transform_2(%arg0: i32, %arg1: i32) -> (i32, i32) {
    %c0_i32 = arith.constant 0 : i32
    %c0_i32_0 = arith.constant 0 : i32
    %c0_i32_1 = arith.constant 0 : i32
    return %c0_i32, %c0_i32_0 : i32, i32
  }
  func.func @transform_3(%arg0: i32, %arg1: i32) -> (i32, i32, i32) {
    %c0_i32 = arith.constant 0 : i32
    %c0_i32_0 = arith.constant 0 : i32
    return %arg0, %arg1, %c0_i32 : i32, i32, i32
  }
}

</mosaic_0001>

<bundles_post_ra>
// kernel: basic_conv2d_forward.1
= control target key start
LH: loop header
LB: loop body
LE: loop exit
PB: predicated region body
PF: predicated region fallthrough
CT: control target
= control target key end

     0   :  { %vm418_vm0 = vcmask 1045504   ;;  %vm321_vm1 = vcmask 97280   ;;  %vm1852_vm2 = vcmask 60416   ;;  %s3578_s1 = inlined_call_operand.vmem [shape: bf16[3,12,8], index: 1, kind: input, shape index: {}]   ;;  %s3579_s0 = inlined_call_operand.vmem [shape: bf16[2,18,16,12], index: 0, kind: input, shape index: {}]   ;;  %s3580_s2 = inlined_call_operand.vmem [shape: f32[2,8], index: 2, kind: input, shape index: {}]   ;;  %s3581_s3 = inlined_call_operand.vmem [shape: bf16[2,256,8], index: 3, kind: output, shape index: {}]  }
   0x1   :  { %v2119_v0 = vld [vmem:[%s3578_s1 + $0x8] sm:$0xf]  ;;  %v2612_v1 = vld [vmem:[%s3578_s1 + $0x8] sm:$0x30]  ;;  %v2283_v2 = vld [vmem:[%s3578_s1] sm:$0xf] }
   0x2   :  { %v2120_v3 = vor.u32 %v2612_v1, %v2119_v0  ;;  %v2579_v4 = vld [vmem:[%s3578_s1] sm:$0x30]  ;;  %v2513_v5 = vld [vmem:[%s3578_s1 + $0x10] sm:$0xf]  ;;  %v2645_v6 = vld [vmem:[%s3578_s1 + $0x10] sm:$0x30] }
   0x3   :  { %v2284_v7 = vor.u32 %v2579_v4, %v2283_v2  ;;  %v2514_v8 = vor.u32 %v2645_v6, %v2513_v5  ;;  %v2580_v10 = vld [vmem:[%s3579_s0 + $0x8] sm:$0xff]  ;;  %v2604_v11 = vld [vmem:[%s3579_s0 + $0xd8] sm:$0xff]  ;;  %v2547_v14 = vld [vmem:[%s3579_s0] sm:$0xff] }
   0x4   :  { %v420_v9 = vsel %vm418_vm0, %v2120_v3, 0  ;;  %v2613_v15 = vld [vmem:[%s3579_s0 + $0x10] sm:$0xff]  ;;  %v2605_v17 = vld [vmem:[%s3579_s0 + $0xe0] sm:$0xff]  ;;  %v2548_v18 = vld [vmem:[%s3579_s0 + $0x8] sm:$0xff] }
   0x5   :  { %429 = vmatpush.bf16.msra.mxu0 %v420_v9  ;;  %2646 = vmatpush.bf16.msra.mxu3 %v420_v9  ;;  %v853_v12 = vsel %vm418_vm0, %v2284_v7, 0  ;;  %v1357_v13 = vsel %vm418_vm0, %v2514_v8, 0  ;;  %v2581_v16 = vld [vmem:[%s3579_s0 + $0x10] sm:$0xff]  ;;  %v2614_v19 = vld [vmem:[%s3579_s0 + $0x18] sm:$0xff]  ;;  %v2606_v21 = vld [vmem:[%s3579_s0 + $0xe8] sm:$0xff] }
   0x6   :  { %862 = vmatpush.bf16.msra.mxu1 %v853_v12  ;;  %1366 = vmatpush.bf16.msra.mxu2 %v1357_v13  ;;  %v2582_v20 = vld [vmem:[%s3579_s0 + $0x18] sm:$0xff]  ;;  %v2549_v22 = vld [vmem:[%s3579_s0 + $0x10] sm:$0xff]  ;;  %v2615_v23 = vld [vmem:[%s3579_s0 + $0x20] sm:$0xff] }
   0x7   :  { %v2583_v24 = vld [vmem:[%s3579_s0 + $0x20] sm:$0xff]  ;;  %v2607_v25 = vld [vmem:[%s3579_s0 + $0xf0] sm:$0xff]  ;;  %v2550_v26 = vld [vmem:[%s3579_s0 + $0x18] sm:$0xff] }
   0x8   :  { %2121 = vmatmul.msk.bf16.vlgmr.msra.gmra.mxu0 %vm321_vm1, %v2580_v10  ;;  %2145 = vmatmul.msk.bf16.vlgmr.msra.gmra.mxu3 %vm321_vm1, %v2604_v11  ;;  %v2616_v27 = vld [vmem:[%s3579_s0 + $0x28] sm:$0xff]  ;;  %v2608_v29 = vld [vmem:[%s3579_s0 + $0xf8] sm:$0xff]  ;;  %v2551_v30 = vld [vmem:[%s3579_s0 + $0x20] sm:$0xff] }
   0x9   :  { %2647 = vmatpush.bf16.msrb.mxu3 %v853_v12  ;;  %2285 = vmatmul.msk.bf16.vlgmr.msra.gmra.mxu1 %vm321_vm1, %v2547_v14  ;;  %v2584_v28 = vld [vmem:[%s3579_s0 + $0x28] sm:$0xff]  ;;  %v2617_v31 = vld [vmem:[%s3579_s0 + $0x30] sm:$0xff]  ;;  %v2609_v33 = vld [vmem:[%s3579_s0 + $0x100] sm:$0xff] }
   0xa   :  { %2515 = vmatmul.msk.bf16.vlgmr.msra.gmra.mxu2 %vm321_vm1, %v2613_v15  ;;  %v2585_v32 = vld [vmem:[%s3579_s0 + $0x30] sm:$0xff]  ;;  %v2552_v34 = vld [vmem:[%s3579_s0 + $0x28] sm:$0xff]  ;;  %v2618_v35 = vld [vmem:[%s3579_s0 + $0x38] sm:$0xff] }
   0xb   :  { %v2586_v36 = vld [vmem:[%s3579_s0 + $0x38] sm:$0xff]  ;;  %v2610_v37 = vld [vmem:[%s3579_s0 + $0x108] sm:$0xff]  ;;  %v2553_v38 = vld [vmem:[%s3579_s0 + $0x30] sm:$0xff] }
   0xc   :  { %v2619_v39 = vld [vmem:[%s3579_s0 + $0x40] sm:$0xff]  ;;  %v2611_v41 = vld [vmem:[%s3579_s0 + $0x110] sm:$0xff]  ;;  %v2554_v42 = vld [vmem:[%s3579_s0 + $0x38] sm:$0xff] }
   0xd   :  { %2648 = vmatpush.bf16.msra.mxu3 %v1357_v13  ;;  %v2587_v40 = vld [vmem:[%s3579_s0 + $0x40] sm:$0xff]  ;;  %v2620_v43 = vld [vmem:[%s3579_s0 + $0x48] sm:$0xff]  ;;  %v2571_v45 = vld [vmem:[%s3579_s0 + $0xd0] sm:$0xff] }
   0xe   :  { %v2588_v44 = vld [vmem:[%s3579_s0 + $0x48] sm:$0xff]  ;;  %v2555_v47 = vld [vmem:[%s3579_s0 + $0x40] sm:$0xff]  ;;  %v2621_v48 = vld [vmem:[%s3579_s0 + $0x50] sm:$0xff] }
   0xf   :  { %v2843_v52 = vld [vmem:[%s3580_s2] ss:$0 sm:$0xff]  ;;  %v2848_v55 = vld [vmem:[%s3580_s2 + $0x1] ss:$0 sm:$0xff]  ;;  %v2589_v0 = vld [vmem:[%s3579_s0 + $0x50] sm:$0xff] }
  0x10   :  { %v2572_v1 = vld [vmem:[%s3579_s0 + $0xd8] sm:$0xff]  ;;  %v2556_v5 = vld [vmem:[%s3579_s0 + $0x48] sm:$0xff] }
  0x11   :  { %v2622_v6 = vld [vmem:[%s3579_s0 + $0x58] sm:$0xff] }
  0x18   :  { %2122 = vmatmul.msk.bf16.gmra.mxu0 %vm321_vm1, %v2581_v16  ;;  %2146 = vmatmul.msk.bf16.gmra.mxu3 %vm321_vm1, %v2605_v17 }
  0x19   :  { %2286 = vmatmul.msk.bf16.gmra.mxu1 %vm321_vm1, %v2548_v18 }
  0x1a   :  { %2516 = vmatmul.msk.bf16.gmra.mxu2 %vm321_vm1, %v2614_v19 }
  0x28   :  { %2123 = vmatmul.msk.bf16.gmra.mxu0 %vm321_vm1, %v2582_v20  ;;  %2147 = vmatmul.msk.bf16.gmra.mxu3 %vm321_vm1, %v2606_v21 }
  0x29   :  { %2287 = vmatmul.msk.bf16.gmra.mxu1 %vm321_vm1, %v2549_v22 }
  0x2a   :  { %2517 = vmatmul.msk.bf16.gmra.mxu2 %vm321_vm1, %v2615_v23 }
  0x38   :  { %2124 = vmatmul.msk.bf16.gmra.mxu0 %vm321_vm1, %v2583_v24  ;;  %2148 = vmatmul.msk.bf16.gmra.mxu3 %vm321_vm1, %v2607_v25  ;;  %v2590_v24 = vld [vmem:[%s3579_s0 + $0x58] sm:$0xff]  ;;  %v2573_v25 = vld [vmem:[%s3579_s0 + $0xe0] sm:$0xff] }
  0x39   :  { %2288 = vmatmul.msk.bf16.gmra.mxu1 %vm321_vm1, %v2550_v26 }
  0x3a   :  { %2518 = vmatmul.msk.bf16.gmra.mxu2 %vm321_vm1, %v2616_v27 }
  0x48   :  { %2125 = vmatmul.msk.bf16.gmra.mxu0 %vm321_vm1, %v2584_v28  ;;  %2149 = vmatmul.msk.bf16.gmra.mxu3 %vm321_vm1, %v2608_v29  ;;  %v2557_v29 = vld [vmem:[%s3579_s0 + $0x50] sm:$0xff] }
  0x49   :  { %2289 = vmatmul.msk.bf16.gmra.mxu1 %vm321_vm1, %v2551_v30  ;;  %v2623_v30 = vld [vmem:[%s3579_s0 + $0x60] sm:$0xff] }
  0x4a   :  { %2519 = vmatmul.msk.bf16.gmra.mxu2 %vm321_vm1, %v2617_v31 }
  0x58   :  { %2126 = vmatmul.msk.bf16.gmra.mxu0 %vm321_vm1, %v2585_v32  ;;  %2150 = vmatmul.msk.bf16.gmra.mxu3 %vm321_vm1, %v2609_v33 }
  0x59   :  { %2290 = vmatmul.msk.bf16.gmra.mxu1 %vm321_vm1, %v2552_v34 }
  0x5a   :  { %2520 = vmatmul.msk.bf16.gmra.mxu2 %vm321_vm1, %v2618_v35 }
  0x68   :  { %2127 = vmatmul.msk.bf16.gmra.mxu0 %vm321_vm1, %v2586_v36  ;;  %2151 = vmatmul.msk.bf16.gmra.mxu3 %vm321_vm1, %v2610_v37 }
  0x69   :  { %2291 = vmatmul.msk.bf16.gmra.mxu1 %vm321_vm1, %v2553_v38 }
  0x6a   :  { %2521 = vmatmul.msk.bf16.gmra.mxu2 %vm321_vm1, %v2619_v39 }
  0x78   :  { %2128 = vmatmul.msk.bf16.gmra.mxu0 %vm321_vm1, %v2587_v40  ;;  %2152 = vmatmul.msk.bf16.gmra.mxu3 %vm321_vm1, %v2611_v41 }
  0x79   :  { %2292 = vmatmul.msk.bf16.gmra.mxu1 %vm321_vm1, %v2554_v42 }
  0x7a   :  { %2522 = vmatmul.msk.bf16.gmra.mxu2 %vm321_vm1, %v2620_v43 }
  0x85   :  { %v431_v46 = vpop.f32.mrf.mxu0 }
  0x86   :  { %v864_v49 = vpop.f32.mrf.mxu1 }
  0x87   :  { %v865_v50 = vadd.f32 %v864_v49, %v431_v46  ;;  %v2574_v49 = vld [vmem:[%s3579_s0 + $0xe8] sm:$0xff] }
  0x88   :  { %2129 = vmatmul.msk.bf16.gmra.mxu0 %vm321_vm1, %v2588_v44  ;;  %2309 = vmatmul.msk.bf16.vlgmr.msrb.gmra.mxu3 %vm321_vm1, %v2571_v45 }
  0x89   :  { %2293 = vmatmul.msk.bf16.gmra.mxu1 %vm321_vm1, %v2555_v47 }
  0x8a   :  { %2523 = vmatmul.msk.bf16.gmra.mxu2 %vm321_vm1, %v2621_v48  ;;  %v2591_v48 = vld [vmem:[%s3579_s0 + $0x60] sm:$0xff] }
  0x8b   :  { %v2838_v51 = vpop.f32.mrf.mxu3 }
  0x8d   :  { %v1368_v53 = vpop.f32.mrf.mxu2  ;;  %v433_v56 = vpop.f32.mrf.mxu0 }
  0x8e   :  { %v1528_v54 = vadd.f32 %v1368_v53, %v865_v50  ;;  %v866_v57 = vpop.f32.mrf.mxu1 }
  0x8f   :  { %v867_v61 = vadd.f32 %v866_v57, %v433_v56  ;;  %v2558_v56 = vld [vmem:[%s3579_s0 + $0x58] sm:$0xff]  ;;  %v2624_v57 = vld [vmem:[%s3579_s0 + $0x68] sm:$0xff] }
  0x90   :  { %v1594_v58 = vmul.f32 %v2843_v52, %v1528_v54 }
  0x92   :  { %v1660_v59 = vadd.f32 %v2848_v55, %v1594_v58 }
  0x93   :  { %v2852_v62 = vpop.f32.mrf.mxu3 }
  0x94   :  { %v1724_v60 = vmax.f32 %v1660_v59, 0.0 }
  0x95   :  { %v1370_v63 = vpop.f32.mrf.mxu2  ;;  %v436_v4 = vpop.f32.mrf.mxu0 }
  0x96   :  { %v1788_v2 = vpack.c.bf16 %v1724_v60, %v1724_v60  ;;  %v1529_v3 = vadd.f32 %v1370_v63, %v867_v61  ;;  %v869_v7 = vpop.f32.mrf.mxu1 }
  0x97   :  { %v870_v10 = vadd.f32 %v869_v7, %v436_v4 }
  0x98   :  { %1853 = vst.msk [vmem:[%s3581_s3] sm:$0xf] %vm1852_vm2, %v1788_v2  ;;  %v1595_v8 = vmul.f32 %v2843_v52, %v1529_v3  ;;  %2130 = vmatmul.msk.bf16.gmra.mxu0 %vm321_vm1, %v2589_v0  ;;  %2310 = vmatmul.msk.bf16.gmra.mxu3 %vm321_vm1, %v2572_v1 }
  0x99   :  { %2294 = vmatmul.msk.bf16.gmra.mxu1 %vm321_vm1, %v2556_v5 }
  0x9a   :  { %v1661_v9 = vadd.f32 %v2848_v55, %v1595_v8  ;;  %2524 = vmatmul.msk.bf16.gmra.mxu2 %vm321_vm1, %v2622_v6 }
  0x9b   :  { %v2876_v12 = vpop.f32.mrf.mxu3 }
  0x9c   :  { %v1725_v11 = vmax.f32 %v1661_v9, 0.0 }
  0x9d   :  { %v1373_v13 = vpop.f32.mrf.mxu2  ;;  %v438_v16 = vpop.f32.mrf.mxu0 }
  0x9e   :  { %v1789_v14 = vpack.c.bf16 %v1725_v11, %v1725_v11  ;;  %v1530_v15 = vadd.f32 %v1373_v13, %v870_v10  ;;  %v871_v17 = vpop.f32.mrf.mxu1  ;;  %v2592_v13 = vld [vmem:[%s3579_s0 + $0x68] sm:$0xff] }
  0x9f   :  { %v872_v21 = vadd.f32 %v871_v17, %v438_v16 }
  0xa0   :  { %1854 = vst.msk [vmem:[%s3581_s3 + $0x4] sm:$0xf] %vm1852_vm2, %v1789_v14  ;;  %v1596_v18 = vmul.f32 %v2843_v52, %v1530_v15  ;;  %v2575_v14 = vld [vmem:[%s3579_s0 + $0xf0] sm:$0xff] }
  0xa2   :  { %v1662_v19 = vadd.f32 %v2848_v55, %v1596_v18  ;;  %v2559_v18 = vld [vmem:[%s3579_s0 + $0x60] sm:$0xff] }
  0xa3   :  { %v2884_v22 = vpop.f32.mrf.mxu3 }
  0xa4   :  { %v1726_v20 = vmax.f32 %v1662_v19, 0.0  ;;  %v2625_v19 = vld [vmem:[%s3579_s0 + $0x70] sm:$0xff] }
  0xa5   :  { %v1375_v23 = vpop.f32.mrf.mxu2  ;;  %v441_v28 = vpop.f32.mrf.mxu0 }
  0xa6   :  { %v1790_v26 = vpack.c.bf16 %v1726_v20, %v1726_v20  ;;  %v1531_v27 = vadd.f32 %v1375_v23, %v872_v21  ;;  %v874_v31 = vpop.f32.mrf.mxu1 }
  0xa7   :  { %v875_v34 = vadd.f32 %v874_v31, %v441_v28 }
  0xa8   :  { %1855 = vst.msk [vmem:[%s3581_s3 + $0x8] sm:$0xf] %vm1852_vm2, %v1790_v26  ;;  %v1597_v32 = vmul.f32 %v2843_v52, %v1531_v27  ;;  %2131 = vmatmul.msk.bf16.gmra.mxu0 %vm321_vm1, %v2590_v24  ;;  %2311 = vmatmul.msk.bf16.gmra.mxu3 %vm321_vm1, %v2573_v25 }
  0xa9   :  { %2295 = vmatmul.msk.bf16.gmra.mxu1 %vm321_vm1, %v2557_v29 }
  0xaa   :  { %v1663_v33 = vadd.f32 %v2848_v55, %v1597_v32  ;;  %2525 = vmatmul.msk.bf16.gmra.mxu2 %vm321_vm1, %v2623_v30 }
  0xab   :  { %v2908_v36 = vpop.f32.mrf.mxu3 }
  0xac   :  { %v1727_v35 = vmax.f32 %v1663_v33, 0.0 }
  0xad   :  { %v1378_v37 = vpop.f32.mrf.mxu2  ;;  %v443_v40 = vpop.f32.mrf.mxu0 }
  0xae   :  { %v1791_v38 = vpack.c.bf16 %v1727_v35, %v1727_v35  ;;  %v1532_v39 = vadd.f32 %v1378_v37, %v875_v34  ;;  %v876_v41 = vpop.f32.mrf.mxu1 }
  0xaf   :  { %v877_v45 = vadd.f32 %v876_v41, %v443_v40  ;;  %v2576_v40 = vld [vmem:[%s3579_s0 + $0xf8] sm:$0xff] }
  0xb0   :  { %1856 = vst.msk [vmem:[%s3581_s3 + $0xc] sm:$0xf] %vm1852_vm2, %v1791_v38  ;;  %v1598_v42 = vmul.f32 %v2843_v52, %v1532_v39  ;;  %v2593_v39 = vld [vmem:[%s3579_s0 + $0x70] sm:$0xff] }
  0xb2   :  { %v1664_v43 = vadd.f32 %v2848_v55, %v1598_v42 }
  0xb3   :  { %v2916_v46 = vpop.f32.mrf.mxu3 }
  0xb4   :  { %v1728_v44 = vmax.f32 %v1664_v43, 0.0 }
  0xb5   :  { %v1380_v47 = vpop.f32.mrf.mxu2  ;;  %v446_v54 = vpop.f32.mrf.mxu0 }
  0xb6   :  { %v1792_v50 = vpack.c.bf16 %v1728_v44, %v1728_v44  ;;  %v1533_v53 = vadd.f32 %v1380_v47, %v877_v45  ;;  %v879_v58 = vpop.f32.mrf.mxu1  ;;  %v2560_v44 = vld [vmem:[%s3579_s0 + $0x68] sm:$0xff]  ;;  %v2626_v45 = vld [vmem:[%s3579_s0 + $0x78] sm:$0xff] }
  0xb7   :  { %v880_v61 = vadd.f32 %v879_v58, %v446_v54 }
  0xb8   :  { %1857 = vst.msk [vmem:[%s3581_s3 + $0x10] sm:$0xf] %vm1852_vm2, %v1792_v50  ;;  %v1599_v59 = vmul.f32 %v2843_v52, %v1533_v53  ;;  %2132 = vmatmul.msk.bf16.gmra.mxu0 %vm321_vm1, %v2591_v48  ;;  %2312 = vmatmul.msk.bf16.gmra.mxu3 %vm321_vm1, %v2574_v49 }
  0xb9   :  { %2296 = vmatmul.msk.bf16.gmra.mxu1 %vm321_vm1, %v2558_v56 }
  0xba   :  { %v1665_v60 = vadd.f32 %v2848_v55, %v1599_v59  ;;  %2526 = vmatmul.msk.bf16.gmra.mxu2 %vm321_vm1, %v2624_v57 }
  0xbb   :  { %v2940_v0 = vpop.f32.mrf.mxu3 }
  0xbc   :  { %v1729_v63 = vmax.f32 %v1665_v60, 0.0 }
  0xbd   :  { %v1383_v1 = vpop.f32.mrf.mxu2  ;;  %v448_v4 = vpop.f32.mrf.mxu0 }
  0xbe   :  { %v1793_v2 = vpack.c.bf16 %v1729_v63, %v1729_v63  ;;  %v1534_v3 = vadd.f32 %v1383_v1, %v880_v61  ;;  %v881_v5 = vpop.f32.mrf.mxu1 }
  0xbf   :  { %v882_v9 = vadd.f32 %v881_v5, %v448_v4  ;;  %v2594_v5 = vld [vmem:[%s3579_s0 + $0x78] sm:$0xff] }
  0xc0   :  { %1858 = vst.msk [vmem:[%s3581_s3 + $0x14] sm:$0xf] %vm1852_vm2, %v1793_v2  ;;  %v1600_v6 = vmul.f32 %v2843_v52, %v1534_v3 }
  0xc2   :  { %v1666_v7 = vadd.f32 %v2848_v55, %v1600_v6  ;;  %v2577_v6 = vld [vmem:[%s3579_s0 + $0x100] sm:$0xff] }
  0xc3   :  { %v2948_v10 = vpop.f32.mrf.mxu3 }
  0xc4   :  { %v1730_v8 = vmax.f32 %v1666_v7, 0.0 }
  0xc5   :  { %v1385_v11 = vpop.f32.mrf.mxu2  ;;  %v451_v17 = vpop.f32.mrf.mxu0 }
  0xc6   :  { %v1794_v15 = vpack.c.bf16 %v1730_v8, %v1730_v8  ;;  %v1535_v16 = vadd.f32 %v1385_v11, %v882_v9  ;;  %v884_v20 = vpop.f32.mrf.mxu1  ;;  %v2561_v11 = vld [vmem:[%s3579_s0 + $0x70] sm:$0xff] }
  0xc7   :  { %v885_v24 = vadd.f32 %v884_v20, %v451_v17 }
  0xc8   :  { %1859 = vst.msk [vmem:[%s3581_s3 + $0x18] sm:$0xf] %vm1852_vm2, %v1794_v15  ;;  %v1601_v21 = vmul.f32 %v2843_v52, %v1535_v16  ;;  %2133 = vmatmul.msk.bf16.gmra.mxu0 %vm321_vm1, %v2592_v13  ;;  %2313 = vmatmul.msk.bf16.gmra.mxu3 %vm321_vm1, %v2575_v14  ;;  %v2627_v13 = vld [vmem:[%s3579_s0 + $0x80] sm:$0xff] }
  0xc9   :  { %2297 = vmatmul.msk.bf16.gmra.mxu1 %vm321_vm1, %v2559_v18 }
  0xca   :  { %v1667_v23 = vadd.f32 %v2848_v55, %v1601_v21  ;;  %2527 = vmatmul.msk.bf16.gmra.mxu2 %vm321_vm1, %v2625_v19 }
  0xcb   :  { %v2972_v26 = vpop.f32.mrf.mxu3 }
  0xcc   :  { %v1731_v25 = vmax.f32 %v1667_v23, 0.0 }
  0xcd   :  { %v1388_v27 = vpop.f32.mrf.mxu2  ;;  %v453_v30 = vpop.f32.mrf.mxu0 }
  0xce   :  { %v1795_v28 = vpack.c.bf16 %v1731_v25, %v1731_v25  ;;  %v1536_v29 = vadd.f32 %v1388_v27, %v885_v24  ;;  %v886_v31 = vpop.f32.mrf.mxu1 }
  0xcf   :  { %v887_v35 = vadd.f32 %v886_v31, %v453_v30 }
  0xd0   :  { %1860 = vst.msk [vmem:[%s3581_s3 + $0x1c] sm:$0xf] %vm1852_vm2, %v1795_v28  ;;  %v1602_v32 = vmul.f32 %v2843_v52, %v1536_v29 }
  0xd2   :  { %v1668_v33 = vadd.f32 %v2848_v55, %v1602_v32 }
  0xd3   :  { %v2980_v37 = vpop.f32.mrf.mxu3 }
  0xd4   :  { %v1732_v34 = vmax.f32 %v1668_v33, 0.0  ;;  %v2595_v33 = vld [vmem:[%s3579_s0 + $0x80] sm:$0xff] }
  0xd5   :  { %v1390_v38 = vpop.f32.mrf.mxu2  ;;  %v456_v43 = vpop.f32.mrf.mxu0 }
  0xd6   :  { %v1796_v41 = vpack.c.bf16 %v1732_v34, %v1732_v34  ;;  %v1537_v42 = vadd.f32 %v1390_v38, %v887_v35  ;;  %v889_v47 = vpop.f32.mrf.mxu1  ;;  %v2578_v34 = vld [vmem:[%s3579_s0 + $0x108] sm:$0xff] }
  0xd7   :  { %v890_v50 = vadd.f32 %v889_v47, %v456_v43 }
  0xd8   :  { %1861 = vst.msk [vmem:[%s3581_s3 + $0x20] sm:$0xf] %vm1852_vm2, %v1796_v41  ;;  %v1603_v48 = vmul.f32 %v2843_v52, %v1537_v42  ;;  %2134 = vmatmul.msk.bf16.gmra.mxu0 %vm321_vm1, %v2593_v39  ;;  %2314 = vmatmul.msk.bf16.gmra.mxu3 %vm321_vm1, %v2576_v40  ;;  %v2562_v40 = vld [vmem:[%s3579_s0 + $0x78] sm:$0xff]  ;;  %v2628_v41 = vld [vmem:[%s3579_s0 + $0x88] sm:$0xff] }
  0xd9   :  { %2298 = vmatmul.msk.bf16.gmra.mxu1 %vm321_vm1, %v2560_v44 }
  0xda   :  { %v1669_v49 = vadd.f32 %v2848_v55, %v1603_v48  ;;  %2528 = vmatmul.msk.bf16.gmra.mxu2 %vm321_vm1, %v2626_v45 }
  0xdb   :  { %v3004_v54 = vpop.f32.mrf.mxu3 }
  0xdc   :  { %v1733_v53 = vmax.f32 %v1669_v49, 0.0 }
  0xdd   :  { %v1393_v56 = vpop.f32.mrf.mxu2  ;;  %v458_v59 = vpop.f32.mrf.mxu0 }
  0xde   :  { %v1797_v57 = vpack.c.bf16 %v1733_v53, %v1733_v53  ;;  %v1538_v58 = vadd.f32 %v1393_v56, %v890_v50  ;;  %v891_v60 = vpop.f32.mrf.mxu1 }
  0xdf   :  { %v892_v2 = vadd.f32 %v891_v60, %v458_v59 }
  0xe0   :  { %1862 = vst.msk [vmem:[%s3581_s3 + $0x24] sm:$0xf] %vm1852_vm2, %v1797_v57  ;;  %v1604_v61 = vmul.f32 %v2843_v52, %v1538_v58 }
  0xe2   :  { %v1670_v63 = vadd.f32 %v2848_v55, %v1604_v61 }
  0xe3   :  { %v3012_v3 = vpop.f32.mrf.mxu3 }
  0xe4   :  { %v1734_v1 = vmax.f32 %v1670_v63, 0.0 }
  0xe5   :  { %v1395_v4 = vpop.f32.mrf.mxu2  ;;  %v461_v9 = vpop.f32.mrf.mxu0 }
  0xe6   :  { %v1798_v7 = vpack.c.bf16 %v1734_v1, %v1734_v1  ;;  %v1539_v8 = vadd.f32 %v1395_v4, %v892_v2  ;;  %v894_v14 = vpop.f32.mrf.mxu1  ;;  %v2596_v2 = vld [vmem:[%s3579_s0 + $0x98] sm:$0xff]  ;;  %v2637_v4 = vld [vmem:[%s3579_s0 + $0xe0] sm:$0xff] }
  0xe7   :  { %v895_v17 = vadd.f32 %v894_v14, %v461_v9  ;;  %v2629_v9 = vld [vmem:[%s3579_s0 + $0xa0] sm:$0xff] }
  0xe8   :  { %1863 = vst.msk [vmem:[%s3581_s3 + $0x28] sm:$0xf] %vm1852_vm2, %v1798_v7  ;;  %v1605_v15 = vmul.f32 %v2843_v52, %v1539_v8  ;;  %2135 = vmatmul.msk.bf16.gmra.mxu0 %vm321_vm1, %v2594_v5  ;;  %2315 = vmatmul.msk.bf16.gmra.mxu3 %vm321_vm1, %v2577_v6  ;;  %v2563_v8 = vld [vmem:[%s3579_s0 + $0x90] sm:$0xff] }
  0xe9   :  { %2299 = vmatmul.msk.bf16.gmra.mxu1 %vm321_vm1, %v2561_v11 }
  0xea   :  { %v1671_v16 = vadd.f32 %v2848_v55, %v1605_v15  ;;  %2529 = vmatmul.msk.bf16.gmra.mxu2 %vm321_vm1, %v2627_v13 }
  0xeb   :  { %v3036_v19 = vpop.f32.mrf.mxu3 }
  0xec   :  { %v1735_v18 = vmax.f32 %v1671_v16, 0.0 }
  0xed   :  { %v1398_v20 = vpop.f32.mrf.mxu2  ;;  %v463_v24 = vpop.f32.mrf.mxu0 }
  0xee   :  { %v1799_v21 = vpack.c.bf16 %v1735_v18, %v1735_v18  ;;  %v1540_v23 = vadd.f32 %v1398_v20, %v895_v17  ;;  %v896_v25 = vpop.f32.mrf.mxu1 }
  0xef   :  { %v897_v30 = vadd.f32 %v896_v25, %v463_v24 }
  0xf0   :  { %1864 = vst.msk [vmem:[%s3581_s3 + $0x2c] sm:$0xf] %vm1852_vm2, %v1799_v21  ;;  %v1606_v27 = vmul.f32 %v2843_v52, %v1540_v23 }
  0xf2   :  { %v1672_v28 = vadd.f32 %v2848_v55, %v1606_v27 }
  0xf3   :  { %v3044_v31 = vpop.f32.mrf.mxu3 }
  0xf4   :  { %v1736_v29 = vmax.f32 %v1672_v28, 0.0 }
  0xf5   :  { %v1400_v32 = vpop.f32.mrf.mxu2  ;;  %v466_v39 = vpop.f32.mrf.mxu0 }
  0xf6   :  { %v1800_v35 = vpack.c.bf16 %v1736_v29, %v1736_v29  ;;  %v1541_v38 = vadd.f32 %v1400_v32, %v897_v30  ;;  %v899_v42 = vpop.f32.mrf.mxu1 }
  0xf7   :  { %v900_v45 = vadd.f32 %v899_v42, %v466_v39 }
  0xf8   :  { %1865 = vst.msk [vmem:[%s3581_s3 + $0x30] sm:$0xf] %vm1852_vm2, %v1800_v35  ;;  %v1607_v43 = vmul.f32 %v2843_v52, %v1541_v38  ;;  %2136 = vmatmul.msk.bf16.gmra.mxu0 %vm321_vm1, %v2595_v33  ;;  %2316 = vmatmul.msk.bf16.gmra.mxu3 %vm321_vm1, %v2578_v34  ;;  %v2597_v33 = vld [vmem:[%s3579_s0 + $0xa0] sm:$0xff]  ;;  %v2638_v34 = vld [vmem:[%s3579_s0 + $0xe8] sm:$0xff] }
  0xf9   :  { %2300 = vmatmul.msk.bf16.gmra.mxu1 %vm321_vm1, %v2562_v40  ;;  %v2564_v40 = vld [vmem:[%s3579_s0 + $0x98] sm:$0xff] }
  0xfa   :  { %v1673_v44 = vadd.f32 %v2848_v55, %v1607_v43  ;;  %2530 = vmatmul.msk.bf16.gmra.mxu2 %vm321_vm1, %v2628_v41  ;;  %v2630_v41 = vld [vmem:[%s3579_s0 + $0xa8] sm:$0xff] }
  0xfb   :  { %v3068_v48 = vpop.f32.mrf.mxu3 }
  0xfc   :  { %v1737_v47 = vmax.f32 %v1673_v44, 0.0 }
  0xfd   :  { %v1403_v49 = vpop.f32.mrf.mxu2  ;;  %v468_v56 = vpop.f32.mrf.mxu0 }
  0xfe   :  { %v1801_v50 = vpack.c.bf16 %v1737_v47, %v1737_v47  ;;  %v1542_v53 = vadd.f32 %v1403_v49, %v900_v45  ;;  %v901_v57 = vpop.f32.mrf.mxu1 }
  0xff   :  { %v902_v61 = vadd.f32 %v901_v57, %v468_v56 }
 0x100   :  { %1866 = vst.msk [vmem:[%s3581_s3 + $0x34] sm:$0xf] %vm1852_vm2, %v1801_v50  ;;  %v1608_v58 = vmul.f32 %v2843_v52, %v1542_v53 }
 0x102   :  { %v1674_v59 = vadd.f32 %v2848_v55, %v1608_v58 }
 0x103   :  { %v3076_v63 = vpop.f32.mrf.mxu3 }
 0x104   :  { %v1738_v60 = vmax.f32 %v1674_v59, 0.0 }
 0x105   :  { %v1405_v1 = vpop.f32.mrf.mxu2  ;;  %v471_v7 = vpop.f32.mrf.mxu0 }
 0x106   :  { %v1802_v5 = vpack.c.bf16 %v1738_v60, %v1738_v60  ;;  %v1543_v6 = vadd.f32 %v1405_v1, %v902_v61  ;;  %v904_v11 = vpop.f32.mrf.mxu1 }
 0x107   :  { %v905_v15 = vadd.f32 %v904_v11, %v471_v7  ;;  %v2565_v11 = vld [vmem:[%s3579_s0 + $0xa0] sm:$0xff] }
 0x108   :  { %1867 = vst.msk [vmem:[%s3581_s3 + $0x38] sm:$0xf] %vm1852_vm2, %v1802_v5  ;;  %v1609_v13 = vmul.f32 %v2843_v52, %v1543_v6  ;;  %2137 = vmatmul.msk.bf16.gmra.mxu0 %vm321_vm1, %v2596_v2  ;;  %2539 = vmatmul.msk.bf16.vlgmr.msra.gmra.mxu3 %vm321_vm1, %v2637_v4  ;;  %v2598_v5 = vld [vmem:[%s3579_s0 + $0xa8] sm:$0xff]  ;;  %v2639_v6 = vld [vmem:[%s3579_s0 + $0xf0] sm:$0xff] }
 0x109   :  { %2301 = vmatmul.msk.bf16.gmra.mxu1 %vm321_vm1, %v2563_v8 }
 0x10a   :  { %v1675_v14 = vadd.f32 %v2848_v55, %v1609_v13  ;;  %2531 = vmatmul.msk.bf16.gmra.mxu2 %vm321_vm1, %v2629_v9  ;;  %v2631_v13 = vld [vmem:[%s3579_s0 + $0xb0] sm:$0xff] }
 0x10b   :  { %v3100_v17 = vpop.f32.mrf.mxu3 }
 0x10c   :  { %v1739_v16 = vmax.f32 %v1675_v14, 0.0 }
 0x10d   :  { %v1408_v18 = vpop.f32.mrf.mxu2  ;;  %v473_v23 = vpop.f32.mrf.mxu0 }
 0x10e   :  { %v1803_v20 = vpack.c.bf16 %v1739_v16, %v1739_v16  ;;  %v1544_v21 = vadd.f32 %v1408_v18, %v905_v15  ;;  %v906_v24 = vpop.f32.mrf.mxu1 }
 0x10f   :  { %v907_v29 = vadd.f32 %v906_v24, %v473_v23 }
 0x110   :  { %1868 = vst.msk [vmem:[%s3581_s3 + $0x3c] sm:$0xf] %vm1852_vm2, %v1803_v20  ;;  %v1610_v25 = vmul.f32 %v2843_v52, %v1544_v21 }
 0x112   :  { %v1676_v27 = vadd.f32 %v2848_v55, %v1610_v25 }
 0x113   :  { %v3108_v30 = vpop.f32.mrf.mxu3 }
 0x114   :  { %v1740_v28 = vmax.f32 %v1676_v27, 0.0 }
 0x115   :  { %v1410_v32 = vpop.f32.mrf.mxu2  ;;  %v476_v39 = vpop.f32.mrf.mxu0 }
 0x116   :  { %v1804_v35 = vpack.c.bf16 %v1740_v28, %v1740_v28  ;;  %v1545_v38 = vadd.f32 %v1410_v32, %v907_v29  ;;  %v909_v42 = vpop.f32.mrf.mxu1 }
 0x117   :  { %v910_v45 = vadd.f32 %v909_v42, %v476_v39  ;;  %v2599_v39 = vld [vmem:[%s3579_s0 + $0xb0] sm:$0xff] }
 0x118   :  { %1869 = vst.msk [vmem:[%s3581_s3 + $0x40] sm:$0xf] %vm1852_vm2, %v1804_v35  ;;  %v1611_v43 = vmul.f32 %v2843_v52, %v1545_v38  ;;  %2138 = vmatmul.msk.bf16.gmra.mxu0 %vm321_vm1, %v2597_v33  ;;  %2540 = vmatmul.msk.bf16.gmra.mxu3 %vm321_vm1, %v2638_v34 }
 0x119   :  { %2302 = vmatmul.msk.bf16.gmra.mxu1 %vm321_vm1, %v2564_v40  ;;  %v2640_v40 = vld [vmem:[%s3579_s0 + $0xf8] sm:$0xff] }
 0x11a   :  { %v1677_v44 = vadd.f32 %v2848_v55, %v1611_v43  ;;  %2532 = vmatmul.msk.bf16.gmra.mxu2 %vm321_vm1, %v2630_v41 }
 0x11b   :  { %v3132_v49 = vpop.f32.mrf.mxu3 }
 0x11c   :  { %v1741_v47 = vmax.f32 %v1677_v44, 0.0  ;;  %v2566_v44 = vld [vmem:[%s3579_s0 + $0xa8] sm:$0xff] }
 0x11d   :  { %v1413_v50 = vpop.f32.mrf.mxu2  ;;  %v478_v57 = vpop.f32.mrf.mxu0 }
 0x11e   :  { %v1805_v53 = vpack.c.bf16 %v1741_v47, %v1741_v47  ;;  %v1546_v56 = vadd.f32 %v1413_v50, %v910_v45  ;;  %v911_v58 = vpop.f32.mrf.mxu1  ;;  %v2632_v45 = vld [vmem:[%s3579_s0 + $0xb8] sm:$0xff] }
 0x11f   :  { %v912_v1 = vadd.f32 %v911_v58, %v478_v57 }
 0x120   :  { %1870 = vst.msk [vmem:[%s3581_s3 + $0x44] sm:$0xf] %vm1852_vm2, %v1805_v53  ;;  %v1612_v59 = vmul.f32 %v2843_v52, %v1546_v56 }
 0x122   :  { %v1678_v60 = vadd.f32 %v2848_v55, %v1612_v59 }
 0x123   :  { %v3140_v2 = vpop.f32.mrf.mxu3 }
 0x124   :  { %v1742_v61 = vmax.f32 %v1678_v60, 0.0 }
 0x125   :  { %v1415_v4 = vpop.f32.mrf.mxu2  ;;  %v481_v9 = vpop.f32.mrf.mxu0 }
 0x126   :  { %v1806_v7 = vpack.c.bf16 %v1742_v61, %v1742_v61  ;;  %v1547_v8 = vadd.f32 %v1415_v4, %v912_v1  ;;  %v914_v14 = vpop.f32.mrf.mxu1 }
 0x127   :  { %v915_v18 = vadd.f32 %v914_v14, %v481_v9  ;;  %v2641_v14 = vld [vmem:[%s3579_s0 + $0x100] sm:$0xff] }
 0x128   :  { %1871 = vst.msk [vmem:[%s3581_s3 + $0x48] sm:$0xf] %vm1852_vm2, %v1806_v7  ;;  %v1613_v15 = vmul.f32 %v2843_v52, %v1547_v8  ;;  %2139 = vmatmul.msk.bf16.gmra.mxu0 %vm321_vm1, %v2598_v5  ;;  %2541 = vmatmul.msk.bf16.gmra.mxu3 %vm321_vm1, %v2639_v6 }
 0x129   :  { %2303 = vmatmul.msk.bf16.gmra.mxu1 %vm321_vm1, %v2565_v11 }
 0x12a   :  { %v1679_v16 = vadd.f32 %v2848_v55, %v1613_v15  ;;  %2533 = vmatmul.msk.bf16.gmra.mxu2 %vm321_vm1, %v2631_v13  ;;  %v2600_v13 = vld [vmem:[%s3579_s0 + $0xb8] sm:$0xff] }
 0x12b   :  { %v3164_v21 = vpop.f32.mrf.mxu3 }
 0x12c   :  { %v1743_v20 = vmax.f32 %v1679_v16, 0.0 }
 0x12d   :  { %v1418_v23 = vpop.f32.mrf.mxu2  ;;  %v483_v27 = vpop.f32.mrf.mxu0 }
 0x12e   :  { %v1807_v24 = vpack.c.bf16 %v1743_v20, %v1743_v20  ;;  %v1548_v25 = vadd.f32 %v1418_v23, %v915_v18  ;;  %v916_v28 = vpop.f32.mrf.mxu1  ;;  %v2567_v20 = vld [vmem:[%s3579_s0 + $0xb0] sm:$0xff]  ;;  %v2633_v23 = vld [vmem:[%s3579_s0 + $0xc0] sm:$0xff] }
 0x12f   :  { %v917_v34 = vadd.f32 %v916_v28, %v483_v27 }
 0x130   :  { %1872 = vst.msk [vmem:[%s3581_s3 + $0x4c] sm:$0xf] %vm1852_vm2, %v1807_v24  ;;  %v1614_v29 = vmul.f32 %v2843_v52, %v1548_v25 }
 0x132   :  { %v1680_v32 = vadd.f32 %v2848_v55, %v1614_v29 }
 0x133   :  { %v3172_v35 = vpop.f32.mrf.mxu3 }
 0x134   :  { %v1744_v33 = vmax.f32 %v1680_v32, 0.0 }
 0x135   :  { %v1420_v38 = vpop.f32.mrf.mxu2  ;;  %v486_v43 = vpop.f32.mrf.mxu0 }
 0x136   :  { %v1808_v41 = vpack.c.bf16 %v1744_v33, %v1744_v33  ;;  %v1549_v42 = vadd.f32 %v1420_v38, %v917_v34  ;;  %v919_v47 = vpop.f32.mrf.mxu1 }
 0x137   :  { %v920_v56 = vadd.f32 %v919_v47, %v486_v43 }
 0x138   :  { %1873 = vst.msk [vmem:[%s3581_s3 + $0x50] sm:$0xf] %vm1852_vm2, %v1808_v41  ;;  %v1615_v50 = vmul.f32 %v2843_v52, %v1549_v42  ;;  %2140 = vmatmul.msk.bf16.gmra.mxu0 %vm321_vm1, %v2599_v39  ;;  %2542 = vmatmul.msk.bf16.gmra.mxu3 %vm321_vm1, %v2640_v40 }
 0x139   :  { %2304 = vmatmul.msk.bf16.gmra.mxu1 %vm321_vm1, %v2566_v44 }
 0x13a   :  { %v1681_v53 = vadd.f32 %v2848_v55, %v1615_v50  ;;  %2534 = vmatmul.msk.bf16.gmra.mxu2 %vm321_vm1, %v2632_v45  ;;  %v2601_v50 = vld [vmem:[%s3579_s0 + $0xc0] sm:$0xff] }
 0x13b   :  { %v3196_v58 = vpop.f32.mrf.mxu3 }
 0x13c   :  { %v1745_v57 = vmax.f32 %v1681_v53, 0.0  ;;  %v2642_v53 = vld [vmem:[%s3579_s0 + $0x108] sm:$0xff] }
 0x13d   :  { %v1423_v59 = vpop.f32.mrf.mxu2  ;;  %v488_v1 = vpop.f32.mrf.mxu0 }
 0x13e   :  { %v1809_v60 = vpack.c.bf16 %v1745_v57, %v1745_v57  ;;  %v1550_v61 = vadd.f32 %v1423_v59, %v920_v56  ;;  %v921_v4 = vpop.f32.mrf.mxu1 }
 0x13f   :  { %v922_v8 = vadd.f32 %v921_v4, %v488_v1 }
 0x140   :  { %1874 = vst.msk [vmem:[%s3581_s3 + $0x54] sm:$0xf] %vm1852_vm2, %v1809_v60  ;;  %v1616_v5 = vmul.f32 %v2843_v52, %v1550_v61  ;;  %v2568_v60 = vld [vmem:[%s3579_s0 + $0xb8] sm:$0xff]  ;;  %v2634_v61 = vld [vmem:[%s3579_s0 + $0xc8] sm:$0xff] }
 0x142   :  { %v1682_v6 = vadd.f32 %v2848_v55, %v1616_v5 }
 0x143   :  { %v3204_v9 = vpop.f32.mrf.mxu3 }
 0x144   :  { %v1746_v7 = vmax.f32 %v1682_v6, 0.0 }
 0x145   :  { %v1425_v11 = vpop.f32.mrf.mxu2  ;;  %v491_v18 = vpop.f32.mrf.mxu0 }
 0x146   :  { %v1810_v15 = vpack.c.bf16 %v1746_v7, %v1746_v7  ;;  %v1551_v16 = vadd.f32 %v1425_v11, %v922_v8  ;;  %v924_v24 = vpop.f32.mrf.mxu1 }
 0x147   :  { %v925_v28 = vadd.f32 %v924_v24, %v491_v18 }
 0x148   :  { %1875 = vst.msk [vmem:[%s3581_s3 + $0x58] sm:$0xf] %vm1852_vm2, %v1810_v15  ;;  %v1617_v25 = vmul.f32 %v2843_v52, %v1551_v16  ;;  %2141 = vmatmul.msk.bf16.gmra.mxu0 %vm321_vm1, %v2600_v13  ;;  %2543 = vmatmul.msk.bf16.gmra.mxu3 %vm321_vm1, %v2641_v14 }
 0x149   :  { %2305 = vmatmul.msk.bf16.gmra.mxu1 %vm321_vm1, %v2567_v20 }
 0x14a   :  { %v1683_v27 = vadd.f32 %v2848_v55, %v1617_v25  ;;  %2535 = vmatmul.msk.bf16.gmra.mxu2 %vm321_vm1, %v2633_v23 }
 0x14b   :  { %v3228_v32 = vpop.f32.mrf.mxu3 }
 0x14c   :  { %v1747_v29 = vmax.f32 %v1683_v27, 0.0 }
 0x14d   :  { %v1428_v33 = vpop.f32.mrf.mxu2  ;;  %v493_v39 = vpop.f32.mrf.mxu0 }
 0x14e   :  { %v1811_v34 = vpack.c.bf16 %v1747_v29, %v1747_v29  ;;  %v1552_v38 = vadd.f32 %v1428_v33, %v925_v28  ;;  %v926_v40 = vpop.f32.mrf.mxu1  ;;  %v2602_v28 = vld [vmem:[%s3579_s0 + $0xc8] sm:$0xff]  ;;  %v2643_v29 = vld [vmem:[%s3579_s0 + $0x110] sm:$0xff] }
 0x14f   :  { %v927_v44 = vadd.f32 %v926_v40, %v493_v39  ;;  %v2569_v39 = vld [vmem:[%s3579_s0 + $0xc0] sm:$0xff]  ;;  %v2635_v40 = vld [vmem:[%s3579_s0 + $0xd0] sm:$0xff] }
 0x150   :  { %1876 = vst.msk [vmem:[%s3581_s3 + $0x5c] sm:$0xf] %vm1852_vm2, %v1811_v34  ;;  %v1618_v41 = vmul.f32 %v2843_v52, %v1552_v38 }
 0x152   :  { %v1684_v42 = vadd.f32 %v2848_v55, %v1618_v41 }
 0x153   :  { %v3236_v45 = vpop.f32.mrf.mxu3 }
 0x154   :  { %v1748_v43 = vmax.f32 %v1684_v42, 0.0 }
 0x155   :  { %v1430_v47 = vpop.f32.mrf.mxu2  ;;  %v496_v59 = vpop.f32.mrf.mxu0 }
 0x156   :  { %v1812_v56 = vpack.c.bf16 %v1748_v43, %v1748_v43  ;;  %v1553_v57 = vadd.f32 %v1430_v47, %v927_v44  ;;  %v929_v1 = vpop.f32.mrf.mxu1 }
 0x157   :  { %v930_v6 = vadd.f32 %v929_v1, %v496_v59 }
 0x158   :  { %1877 = vst.msk [vmem:[%s3581_s3 + $0x60] sm:$0xf] %vm1852_vm2, %v1812_v56  ;;  %v1619_v4 = vmul.f32 %v2843_v52, %v1553_v57  ;;  %2142 = vmatmul.msk.bf16.gmra.mxu0 %vm321_vm1, %v2601_v50  ;;  %2544 = vmatmul.msk.bf16.gmra.mxu3 %vm321_vm1, %v2642_v53 }
 0x159   :  { %2306 = vmatmul.msk.bf16.gmra.mxu1 %vm321_vm1, %v2568_v60 }
 0x15a   :  { %v1685_v5 = vadd.f32 %v2848_v55, %v1619_v4  ;;  %2536 = vmatmul.msk.bf16.gmra.mxu2 %vm321_vm1, %v2634_v61 }
 0x15b   :  { %v3260_v8 = vpop.f32.mrf.mxu3 }
 0x15c   :  { %v1749_v7 = vmax.f32 %v1685_v5, 0.0 }
 0x15d   :  { %v1433_v11 = vpop.f32.mrf.mxu2  ;;  %v498_v15 = vpop.f32.mrf.mxu0 }
 0x15e   :  { %v1813_v13 = vpack.c.bf16 %v1749_v7, %v1749_v7  ;;  %v1554_v14 = vadd.f32 %v1433_v11, %v930_v6  ;;  %v931_v16 = vpop.f32.mrf.mxu1  ;;  %v2603_v11 = vld [vmem:[%s3579_s0 + $0xd0] sm:$0xff] }
 0x15f   :  { %v932_v24 = vadd.f32 %v931_v16, %v498_v15 }
 0x160   :  { %1878 = vst.msk [vmem:[%s3581_s3 + $0x64] sm:$0xf] %vm1852_vm2, %v1813_v13  ;;  %v1620_v18 = vmul.f32 %v2843_v52, %v1554_v14  ;;  %v2644_v13 = vld [vmem:[%s3579_s0 + $0x118] sm:$0xff] }
 0x162   :  { %v1686_v20 = vadd.f32 %v2848_v55, %v1620_v18  ;;  %v2570_v18 = vld [vmem:[%s3579_s0 + $0xc8] sm:$0xff] }
 0x163   :  { %v3268_v25 = vpop.f32.mrf.mxu3 }
 0x164   :  { %v1750_v23 = vmax.f32 %v1686_v20, 0.0  ;;  %v2636_v20 = vld [vmem:[%s3579_s0 + $0xd8] sm:$0xff] }
 0x165   :  { %v1435_v27 = vpop.f32.mrf.mxu2  ;;  %v501_v38 = vpop.f32.mrf.mxu0 }
 0x166   :  { %v1814_v33 = vpack.c.bf16 %v1750_v23, %v1750_v23  ;;  %v1555_v34 = vadd.f32 %v1435_v27, %v932_v24  ;;  %v934_v41 = vpop.f32.mrf.mxu1 }
 0x167   :  { %v935_v44 = vadd.f32 %v934_v41, %v501_v38 }
 0x168   :  { %1879 = vst.msk [vmem:[%s3581_s3 + $0x68] sm:$0xf] %vm1852_vm2, %v1814_v33  ;;  %v1621_v42 = vmul.f32 %v2843_v52, %v1555_v34  ;;  %2143 = vmatmul.msk.bf16.gmra.mxu0 %vm321_vm1, %v2602_v28  ;;  %2545 = vmatmul.msk.bf16.gmra.mxu3 %vm321_vm1, %v2643_v29 }
 0x169   :  { %2307 = vmatmul.msk.bf16.gmra.mxu1 %vm321_vm1, %v2569_v39 }
 0x16a   :  { %v1687_v43 = vadd.f32 %v2848_v55, %v1621_v42  ;;  %2537 = vmatmul.msk.bf16.gmra.mxu2 %vm321_vm1, %v2635_v40 }
 0x16b   :  { %v3292_v50 = vpop.f32.mrf.mxu3 }
 0x16c   :  { %v1751_v47 = vmax.f32 %v1687_v43, 0.0 }
 0x16d   :  { %v1438_v53 = vpop.f32.mrf.mxu2  ;;  %v503_v59 = vpop.f32.mrf.mxu0 }
 0x16e   :  { %v1815_v56 = vpack.c.bf16 %v1751_v47, %v1751_v47  ;;  %v1556_v57 = vadd.f32 %v1438_v53, %v935_v44  ;;  %v936_v60 = vpop.f32.mrf.mxu1 }
 0x16f   :  { %v937_v5 = vadd.f32 %v936_v60, %v503_v59 }
 0x170   :  { %1880 = vst.msk [vmem:[%s3581_s3 + $0x6c] sm:$0xf] %vm1852_vm2, %v1815_v56  ;;  %v1622_v61 = vmul.f32 %v2843_v52, %v1556_v57 }
 0x172   :  { %v1688_v1 = vadd.f32 %v2848_v55, %v1622_v61 }
 0x173   :  { %v3300_v6 = vpop.f32.mrf.mxu3 }
 0x174   :  { %v1752_v4 = vmax.f32 %v1688_v1, 0.0 }
 0x175   :  { %v1440_v7 = vpop.f32.mrf.mxu2  ;;  %v506_v16 = vpop.f32.mrf.mxu0 }
 0x176   :  { %v1816_v14 = vpack.c.bf16 %v1752_v4, %v1752_v4  ;;  %v1557_v15 = vadd.f32 %v1440_v7, %v937_v5  ;;  %v939_v23 = vpop.f32.mrf.mxu1  ;;  %v985_v7 = vadd.f32 %v3100_v17, %v2838_v51  ;;  %v987_v17 = vadd.f32 %v3108_v30, %v2852_v62 }
 0x177   :  { %v940_v28 = vadd.f32 %v939_v23, %v506_v16 }
 0x178   :  { %1881 = vst.msk [vmem:[%s3581_s3 + $0x70] sm:$0xf] %vm1852_vm2, %v1816_v14  ;;  %v1623_v24 = vmul.f32 %v2843_v52, %v1557_v15  ;;  %2144 = vmatmul.msk.bf16.gmra.mxu0 %vm321_vm1, %v2603_v11  ;;  %2546 = vmatmul.msk.bf16.gmra.mxu3 %vm321_vm1, %v2644_v13 }
 0x179   :  { %2308 = vmatmul.msk.bf16.gmra.mxu1 %vm321_vm1, %v2570_v18 }
 0x17a   :  { %v1689_v27 = vadd.f32 %v2848_v55, %v1623_v24  ;;  %2538 = vmatmul.msk.bf16.gmra.mxu2 %vm321_vm1, %v2636_v20 }
 0x17b   :  { %v3324_v33 = vpop.f32.mrf.mxu3 }
 0x17c   :  { %v1753_v29 = vmax.f32 %v1689_v27, 0.0 }
 0x17d   :  { %v1443_v34 = vpop.f32.mrf.mxu2  ;;  %v508_v40 = vpop.f32.mrf.mxu0 }
 0x17e   :  { %v1817_v38 = vpack.c.bf16 %v1753_v29, %v1753_v29  ;;  %v1558_v39 = vadd.f32 %v1443_v34, %v940_v28  ;;  %v941_v41 = vpop.f32.mrf.mxu1 }
 0x17f   :  { %v942_v47 = vadd.f32 %v941_v41, %v508_v40 }
 0x180   :  { %1882 = vst.msk [vmem:[%s3581_s3 + $0x74] sm:$0xf] %vm1852_vm2, %v1817_v38  ;;  %v1624_v42 = vmul.f32 %v2843_v52, %v1558_v39 }
 0x182   :  { %v1690_v43 = vadd.f32 %v2848_v55, %v1624_v42 }
 0x183   :  { %v3332_v53 = vpop.f32.mrf.mxu3 }
 0x184   :  { %v1754_v44 = vmax.f32 %v1690_v43, 0.0 }
 0x185   :  { %v1445_v56 = vpop.f32.mrf.mxu2  ;;  %v511_v60 = vpop.f32.mrf.mxu0 }
 0x186   :  { %v1818_v57 = vpack.c.bf16 %v1754_v44, %v1754_v44  ;;  %v1559_v59 = vadd.f32 %v1445_v56, %v942_v47  ;;  %v944_v61 = vpop.f32.mrf.mxu1 }
 0x187   :  { %v945_v5 = vadd.f32 %v944_v61, %v511_v60  ;;  %v990_v61 = vadd.f32 %v3132_v49, %v2876_v12 }
 0x188   :  { %1883 = vst.msk [vmem:[%s3581_s3 + $0x78] sm:$0xf] %vm1852_vm2, %v1818_v57  ;;  %v1625_v1 = vmul.f32 %v2843_v52, %v1559_v59 }
 0x18a   :  { %v1691_v4 = vadd.f32 %v2848_v55, %v1625_v1 }
 0x18b   :  { %v1488_v13 = vpop.f32.mrf.mxu3 }
 0x18c   :  { %v1755_v11 = vmax.f32 %v1691_v4, 0.0  ;;  %v1576_v15 = vadd.f32 %v1488_v13, %v985_v7 }
 0x18d   :  { %v1448_v14 = vpop.f32.mrf.mxu2  ;;  %v513_v20 = vpop.f32.mrf.mxu0 }
 0x18e   :  { %v1819_v16 = vpack.c.bf16 %v1755_v11, %v1755_v11  ;;  %v1560_v18 = vadd.f32 %v1448_v14, %v945_v5  ;;  %v1642_v23 = vmul.f32 %v2843_v52, %v1576_v15  ;;  %v946_v24 = vpop.f32.mrf.mxu1 }
 0x18f   :  { %v947_v38 = vadd.f32 %v946_v24, %v513_v20  ;;  %v992_v24 = vadd.f32 %v3140_v2, %v2884_v22 }
 0x190   :  { %1884 = vst.msk [vmem:[%s3581_s3 + $0x7c] sm:$0xf] %vm1852_vm2, %v1819_v16  ;;  %v1626_v27 = vmul.f32 %v2843_v52, %v1560_v18  ;;  %v1708_v28 = vadd.f32 %v2848_v55, %v1642_v23  ;;  %v3384_v18 = vld [vmem:[%s3580_s2 + $0x1] ss:$0 sm:$0xff] }
 0x192   :  { %v1692_v51 = vadd.f32 %v2848_v55, %v1626_v27  ;;  %v1772_v29 = vmax.f32 %v1708_v28, 0.0 }
 0x193   :  { %v1490_v39 = vpop.f32.mrf.mxu3 }
 0x194   :  { %v1756_v34 = vmax.f32 %v1692_v51, 0.0  ;;  %v1836_v40 = vpack.c.bf16 %v1772_v29, %v1772_v29  ;;  %v1577_v42 = vadd.f32 %v1490_v39, %v987_v17 }
 0x195   :  { %v1450_v41 = vpop.f32.mrf.mxu2  ;;  %v516_v47 = vpop.f32.mrf.mxu0 }
 0x196   :  { %v1820_v43 = vpack.c.bf16 %v1756_v34, %v1756_v34  ;;  %v1561_v44 = vadd.f32 %v1450_v41, %v947_v38  ;;  %1901 = vst.msk [vmem:[%s3581_s3 + $0xc0] sm:$0xf] %vm1852_vm2, %v1836_v40  ;;  %v1643_v56 = vmul.f32 %v2843_v52, %v1577_v42  ;;  %v949_v57 = vpop.f32.mrf.mxu1 }
 0x197   :  { %v950_v60 = vadd.f32 %v949_v57, %v516_v47 }
 0x198   :  { %1885 = vst.msk [vmem:[%s3581_s3 + $0x80] sm:$0xf] %vm1852_vm2, %v1820_v43  ;;  %v1627_v62 = vmul.f32 %v2843_v52, %v1561_v44  ;;  %v1709_v30 = vadd.f32 %v2848_v55, %v1643_v56  ;;  %v3373_v52 = vld [vmem:[%s3580_s2] ss:$0 sm:$0xff]  ;;  %v995_v56 = vadd.f32 %v3164_v21, %v2908_v36 }
 0x19a   :  { %v1693_v59 = vadd.f32 %v2848_v55, %v1627_v62  ;;  %v1773_v1 = vmax.f32 %v1709_v30, 0.0 }
 0x19b   :  { %v1493_v5 = vpop.f32.mrf.mxu3 }
 0x19c   :  { %v1757_v4 = vmax.f32 %v1693_v59, 0.0  ;;  %v1837_v7 = vpack.c.bf16 %v1773_v1, %v1773_v1  ;;  %v1578_v13 = vadd.f32 %v1493_v5, %v990_v61 }
 0x19d   :  { %v1453_v11 = vpop.f32.mrf.mxu2  ;;  %v518_v16 = vpop.f32.mrf.mxu0 }
 0x19e   :  { %v1821_v14 = vpack.c.bf16 %v1757_v4, %v1757_v4  ;;  %v1562_v15 = vadd.f32 %v1453_v11, %v950_v60  ;;  %1902 = vst.msk [vmem:[%s3581_s3 + $0xc4] sm:$0xf] %vm1852_vm2, %v1837_v7  ;;  %v1644_v55 = vmul.f32 %v3373_v52, %v1578_v13  ;;  %v951_v12 = vpop.f32.mrf.mxu1 }
 0x19f   :  { %v952_v51 = vadd.f32 %v951_v12, %v518_v16 }
 0x1a0   :  { %1886 = vst.msk [vmem:[%s3581_s3 + $0x84] sm:$0xf] %vm1852_vm2, %v1821_v14  ;;  %v1628_v49 = vmul.f32 %v3373_v52, %v1562_v15  ;;  %v1710_v20 = vadd.f32 %v3384_v18, %v1644_v55  ;;  %v997_v14 = vadd.f32 %v3172_v35, %v2916_v46 }
 0x1a2   :  { %v1694_v23 = vadd.f32 %v3384_v18, %v1628_v49  ;;  %v1774_v27 = vmax.f32 %v1710_v20, 0.0 }
 0x1a3   :  { %v1495_v17 = vpop.f32.mrf.mxu3 }
 0x1a4   :  { %v1758_v28 = vmax.f32 %v1694_v23, 0.0  ;;  %v1838_v29 = vpack.c.bf16 %v1774_v27, %v1774_v27  ;;  %v1579_v38 = vadd.f32 %v1495_v17, %v992_v24 }
 0x1a5   :  { %v1455_v34 = vpop.f32.mrf.mxu2  ;;  %v521_v41 = vpop.f32.mrf.mxu0 }
 0x1a6   :  { %v1822_v39 = vpack.c.bf16 %v1758_v28, %v1758_v28  ;;  %v1563_v40 = vadd.f32 %v1455_v34, %v952_v51  ;;  %1903 = vst.msk [vmem:[%s3581_s3 + $0xc8] sm:$0xf] %vm1852_vm2, %v1838_v29  ;;  %v1645_v42 = vmul.f32 %v3373_v52, %v1579_v38  ;;  %v954_v43 = vpop.f32.mrf.mxu1  ;;  %v1000_v38 = vadd.f32 %v3196_v58, %v2940_v0 }
 0x1a7   :  { %v955_v47 = vadd.f32 %v954_v43, %v521_v41 }
 0x1a8   :  { %1887 = vst.msk [vmem:[%s3581_s3 + $0x88] sm:$0xf] %vm1852_vm2, %v1822_v39  ;;  %v1629_v22 = vmul.f32 %v3373_v52, %v1563_v40  ;;  %v1711_v2 = vadd.f32 %v3384_v18, %v1645_v42 }
 0x1aa   :  { %v1695_v44 = vadd.f32 %v3384_v18, %v1629_v22  ;;  %v1775_v57 = vmax.f32 %v1711_v2, 0.0 }
 0x1ab   :  { %v1498_v30 = vpop.f32.mrf.mxu3 }
 0x1ac   :  { %v1759_v62 = vmax.f32 %v1695_v44, 0.0  ;;  %v1839_v59 = vpack.c.bf16 %v1775_v57, %v1775_v57  ;;  %v1580_v61 = vadd.f32 %v1498_v30, %v995_v56  ;;  %v1002_v30 = vadd.f32 %v3204_v9, %v2948_v10 }
 0x1ad   :  { %v1458_v60 = vpop.f32.mrf.mxu2  ;;  %v523_v5 = vpop.f32.mrf.mxu0 }
 0x1ae   :  { %v1823_v1 = vpack.c.bf16 %v1759_v62, %v1759_v62  ;;  %v1564_v4 = vadd.f32 %v1458_v60, %v955_v47  ;;  %1904 = vst.msk [vmem:[%s3581_s3 + $0xcc] sm:$0xf] %vm1852_vm2, %v1839_v59  ;;  %v1646_v7 = vmul.f32 %v3373_v52, %v1580_v61  ;;  %v956_v11 = vpop.f32.mrf.mxu1 }
 0x1af   :  { %v957_v55 = vadd.f32 %v956_v11, %v523_v5 }
 0x1b0   :  { %1888 = vst.msk [vmem:[%s3581_s3 + $0x8c] sm:$0xf] %vm1852_vm2, %v1823_v1  ;;  %v1630_v36 = vmul.f32 %v3373_v52, %v1564_v4  ;;  %v1712_v21 = vadd.f32 %v3384_v18, %v1646_v7 }
 0x1b2   :  { %v1696_v13 = vadd.f32 %v3384_v18, %v1630_v36  ;;  %v1776_v15 = vmax.f32 %v1712_v21, 0.0 }
 0x1b3   :  { %v1500_v12 = vpop.f32.mrf.mxu3 }
 0x1b4   :  { %v1760_v16 = vmax.f32 %v1696_v13, 0.0  ;;  %v1840_v49 = vpack.c.bf16 %v1776_v15, %v1776_v15  ;;  %v1581_v23 = vadd.f32 %v1500_v12, %v997_v14 }
 0x1b5   :  { %v1460_v20 = vpop.f32.mrf.mxu2  ;;  %v526_v28 = vpop.f32.mrf.mxu0 }
 0x1b6   :  { %v1824_v24 = vpack.c.bf16 %v1760_v16, %v1760_v16  ;;  %v1565_v27 = vadd.f32 %v1460_v20, %v957_v55  ;;  %1905 = vst.msk [vmem:[%s3581_s3 + $0xd0] sm:$0xf] %vm1852_vm2, %v1840_v49  ;;  %v1647_v51 = vmul.f32 %v3373_v52, %v1581_v23  ;;  %v959_v17 = vpop.f32.mrf.mxu1  ;;  %v1005_v55 = vadd.f32 %v3228_v32, %v2972_v26 }
 0x1b7   :  { %v960_v34 = vadd.f32 %v959_v17, %v526_v28 }
 0x1b8   :  { %1889 = vst.msk [vmem:[%s3581_s3 + $0x90] sm:$0xf] %vm1852_vm2, %v1824_v24  ;;  %v1631_v46 = vmul.f32 %v3373_v52, %v1565_v27  ;;  %v1713_v35 = vadd.f32 %v3384_v18, %v1647_v51 }
 0x1ba   :  { %v1697_v29 = vadd.f32 %v3384_v18, %v1631_v46  ;;  %v1777_v39 = vmax.f32 %v1713_v35, 0.0 }
 0x1bb   :  { %v1503_v41 = vpop.f32.mrf.mxu3 }
 0x1bc   :  { %v1761_v40 = vmax.f32 %v1697_v29, 0.0  ;;  %v1841_v42 = vpack.c.bf16 %v1777_v39, %v1777_v39  ;;  %v1582_v22 = vadd.f32 %v1503_v41, %v1000_v38 }
 0x1bd   :  { %v1463_v43 = vpop.f32.mrf.mxu2  ;;  %v528_v47 = vpop.f32.mrf.mxu0 }
 0x1be   :  { %v1825_v2 = vpack.c.bf16 %v1761_v40, %v1761_v40  ;;  %v1566_v44 = vadd.f32 %v1463_v43, %v960_v34  ;;  %1906 = vst.msk [vmem:[%s3581_s3 + $0xd4] sm:$0xf] %vm1852_vm2, %v1841_v42  ;;  %v1648_v56 = vmul.f32 %v3373_v52, %v1582_v22  ;;  %v961_v57 = vpop.f32.mrf.mxu1  ;;  %v1007_v34 = vadd.f32 %v3236_v45, %v2980_v37 }
 0x1bf   :  { %v962_v61 = vadd.f32 %v961_v57, %v528_v47 }
 0x1c0   :  { %1890 = vst.msk [vmem:[%s3581_s3 + $0x94] sm:$0xf] %vm1852_vm2, %v1825_v2  ;;  %v1632_v0 = vmul.f32 %v3373_v52, %v1566_v44  ;;  %v1714_v58 = vadd.f32 %v3384_v18, %v1648_v56 }
 0x1c2   :  { %v1698_v62 = vadd.f32 %v3384_v18, %v1632_v0  ;;  %v1778_v59 = vmax.f32 %v1714_v58, 0.0 }
 0x1c3   :  { %v1505_v1 = vpop.f32.mrf.mxu3 }
 0x1c4   :  { %v1762_v60 = vmax.f32 %v1698_v62, 0.0  ;;  %v1842_v4 = vpack.c.bf16 %v1778_v59, %v1778_v59  ;;  %v1583_v7 = vadd.f32 %v1505_v1, %v1002_v30  ;;  %v1010_v62 = vadd.f32 %v3260_v8, %v3004_v54 }
 0x1c5   :  { %v1465_v5 = vpop.f32.mrf.mxu2  ;;  %v531_v21 = vpop.f32.mrf.mxu0 }
 0x1c6   :  { %v1826_v11 = vpack.c.bf16 %v1762_v60, %v1762_v60  ;;  %v1567_v36 = vadd.f32 %v1465_v5, %v962_v61  ;;  %1907 = vst.msk [vmem:[%s3581_s3 + $0xd8] sm:$0xf] %vm1852_vm2, %v1842_v4  ;;  %v1649_v13 = vmul.f32 %v3373_v52, %v1583_v7  ;;  %v964_v14 = vpop.f32.mrf.mxu1 }
 0x1c7   :  { %v965_v16 = vadd.f32 %v964_v14, %v531_v21  ;;  %v1012_v14 = vadd.f32 %v3268_v25, %v3012_v3 }
 0x1c8   :  { %1891 = vst.msk [vmem:[%s3581_s3 + $0x98] sm:$0xf] %vm1852_vm2, %v1826_v11  ;;  %v1633_v10 = vmul.f32 %v3373_v52, %v1567_v36  ;;  %v1715_v9 = vadd.f32 %v3384_v18, %v1649_v13 }
 0x1ca   :  { %v1699_v15 = vadd.f32 %v3384_v18, %v1633_v10  ;;  %v1779_v12 = vmax.f32 %v1715_v9, 0.0 }
 0x1cb   :  { %v1508_v20 = vpop.f32.mrf.mxu3 }
 0x1cc   :  { %v1763_v49 = vmax.f32 %v1699_v15, 0.0  ;;  %v1843_v23 = vpack.c.bf16 %v1779_v12, %v1779_v12  ;;  %v1584_v27 = vadd.f32 %v1508_v20, %v1005_v55 }
 0x1cd   :  { %v1468_v24 = vpop.f32.mrf.mxu2  ;;  %v533_v17 = vpop.f32.mrf.mxu0 }
 0x1ce   :  { %v1827_v28 = vpack.c.bf16 %v1763_v49, %v1763_v49  ;;  %v1568_v51 = vadd.f32 %v1468_v24, %v965_v16  ;;  %1908 = vst.msk [vmem:[%s3581_s3 + $0xdc] sm:$0xf] %vm1852_vm2, %v1843_v23  ;;  %v1650_v46 = vmul.f32 %v3373_v52, %v1584_v27  ;;  %v966_v35 = vpop.f32.mrf.mxu1 }
 0x1cf   :  { %v967_v40 = vadd.f32 %v966_v35, %v533_v17 }
 0x1d0   :  { %1892 = vst.msk [vmem:[%s3581_s3 + $0x9c] sm:$0xf] %vm1852_vm2, %v1827_v28  ;;  %v1634_v26 = vmul.f32 %v3373_v52, %v1568_v51  ;;  %v1716_v32 = vadd.f32 %v3384_v18, %v1650_v46  ;;  %v1015_v46 = vadd.f32 %v3292_v50, %v3036_v19 }
 0x1d2   :  { %v1700_v29 = vadd.f32 %v3384_v18, %v1634_v26  ;;  %v1780_v38 = vmax.f32 %v1716_v32, 0.0 }
 0x1d3   :  { %v1510_v41 = vpop.f32.mrf.mxu3 }
 0x1d4   :  { %v1764_v39 = vmax.f32 %v1700_v29, 0.0  ;;  %v1844_v42 = vpack.c.bf16 %v1780_v38, %v1780_v38  ;;  %v1585_v22 = vadd.f32 %v1510_v41, %v1007_v34 }
 0x1d5   :  { %v1470_v43 = vpop.f32.mrf.mxu2  ;;  %v536_v47 = vpop.f32.mrf.mxu0 }
 0x1d6   :  { %v1828_v2 = vpack.c.bf16 %v1764_v39, %v1764_v39  ;;  %v1569_v44 = vadd.f32 %v1470_v43, %v967_v40  ;;  %1909 = vst.msk [vmem:[%s3581_s3 + $0xe0] sm:$0xf] %vm1852_vm2, %v1844_v42  ;;  %v1651_v56 = vmul.f32 %v3373_v52, %v1585_v22  ;;  %v969_v57 = vpop.f32.mrf.mxu1 }
 0x1d7   :  { %v970_v58 = vadd.f32 %v969_v57, %v536_v47 }
 0x1d8   :  { %1893 = vst.msk [vmem:[%s3581_s3 + $0xa0] sm:$0xf] %vm1852_vm2, %v1828_v2  ;;  %v1635_v37 = vmul.f32 %v3373_v52, %v1569_v44  ;;  %v1717_v45 = vadd.f32 %v3384_v18, %v1651_v56  ;;  %v1017_v2 = vadd.f32 %v3300_v6, %v3044_v31 }
 0x1da   :  { %v1701_v0 = vadd.f32 %v3384_v18, %v1635_v37  ;;  %v1781_v30 = vmax.f32 %v1717_v45, 0.0 }
 0x1db   :  { %v1513_v60 = vpop.f32.mrf.mxu3 }
 0x1dc   :  { %v1765_v59 = vmax.f32 %v1701_v0, 0.0  ;;  %v1845_v61 = vpack.c.bf16 %v1781_v30, %v1781_v30  ;;  %v1586_v4 = vadd.f32 %v1513_v60, %v1010_v62 }
 0x1dd   :  { %v1473_v1 = vpop.f32.mrf.mxu2  ;;  %v538_v11 = vpop.f32.mrf.mxu0 }
 0x1de   :  { %v1829_v5 = vpack.c.bf16 %v1765_v59, %v1765_v59  ;;  %v1570_v7 = vadd.f32 %v1473_v1, %v970_v58  ;;  %1910 = vst.msk [vmem:[%s3581_s3 + $0xe4] sm:$0xf] %vm1852_vm2, %v1845_v61  ;;  %v1652_v36 = vmul.f32 %v3373_v52, %v1586_v4  ;;  %v971_v21 = vpop.f32.mrf.mxu1  ;;  %v1020_v4 = vadd.f32 %v3324_v33, %v3068_v48 }
 0x1df   :  { %v972_v15 = vadd.f32 %v971_v21, %v538_v11 }
 0x1e0   :  { %1894 = vst.msk [vmem:[%s3581_s3 + $0xa4] sm:$0xf] %vm1852_vm2, %v1829_v5  ;;  %v1636_v54 = vmul.f32 %v3373_v52, %v1570_v7  ;;  %v1718_v8 = vadd.f32 %v3384_v18, %v1652_v36 }
 0x1e2   :  { %v1702_v13 = vadd.f32 %v3384_v18, %v1636_v54  ;;  %v1782_v10 = vmax.f32 %v1718_v8, 0.0 }
 0x1e3   :  { %v1515_v16 = vpop.f32.mrf.mxu3 }
 0x1e4   :  { %v1766_v9 = vmax.f32 %v1702_v13, 0.0  ;;  %v1846_v55 = vpack.c.bf16 %v1782_v10, %v1782_v10  ;;  %v1587_v49 = vadd.f32 %v1515_v16, %v1012_v14  ;;  %v1022_v16 = vadd.f32 %v3332_v53, %v3076_v63 }
 0x1e5   :  { %v1475_v12 = vpop.f32.mrf.mxu2  ;;  %v541_v24 = vpop.f32.mrf.mxu0 }
 0x1e6   :  { %v1830_v20 = vpack.c.bf16 %v1766_v9, %v1766_v9  ;;  %v1571_v23 = vadd.f32 %v1475_v12, %v972_v15  ;;  %1911 = vst.msk [vmem:[%s3581_s3 + $0xe8] sm:$0xf] %vm1852_vm2, %v1846_v55  ;;  %v1653_v27 = vmul.f32 %v3373_v52, %v1587_v49  ;;  %v974_v28 = vpop.f32.mrf.mxu1 }
 0x1e7   :  { %v975_v17 = vadd.f32 %v974_v28, %v541_v24 }
 0x1e8   :  { %1895 = vst.msk [vmem:[%s3581_s3 + $0xa8] sm:$0xf] %vm1852_vm2, %v1830_v20  ;;  %v1637_v3 = vmul.f32 %v3373_v52, %v1571_v23  ;;  %v1719_v25 = vadd.f32 %v3384_v18, %v1653_v27 }
 0x1ea   :  { %v1703_v51 = vadd.f32 %v3384_v18, %v1637_v3  ;;  %v1783_v35 = vmax.f32 %v1719_v25, 0.0 }
 0x1eb   :  { %v1518_v32 = vpop.f32.mrf.mxu3 }
 0x1ec   :  { %v1767_v26 = vmax.f32 %v1703_v51, 0.0  ;;  %v1847_v29 = vpack.c.bf16 %v1783_v35, %v1783_v35  ;;  %v1588_v38 = vadd.f32 %v1518_v32, %v1015_v46 }
 0x1ed   :  { %v1478_v34 = vpop.f32.mrf.mxu2  ;;  %v543_v41 = vpop.f32.mrf.mxu0 }
 0x1ee   :  { %v1831_v39 = vpack.c.bf16 %v1767_v26, %v1767_v26  ;;  %v1572_v40 = vadd.f32 %v1478_v34, %v975_v17  ;;  %1912 = vst.msk [vmem:[%s3581_s3 + $0xec] sm:$0xf] %vm1852_vm2, %v1847_v29  ;;  %v1654_v42 = vmul.f32 %v3373_v52, %v1588_v38  ;;  %v976_v43 = vpop.f32.mrf.mxu1 }
 0x1ef   :  { %v977_v56 = vadd.f32 %v976_v43, %v543_v41 }
 0x1f0   :  { %1896 = vst.msk [vmem:[%s3581_s3 + $0xac] sm:$0xf] %vm1852_vm2, %v1831_v39  ;;  %v1638_v19 = vmul.f32 %v3373_v52, %v1572_v40  ;;  %v1720_v50 = vadd.f32 %v3384_v18, %v1654_v42 }
 0x1f2   :  { %v1704_v22 = vadd.f32 %v3384_v18, %v1638_v19  ;;  %v1784_v44 = vmax.f32 %v1720_v50, 0.0 }
 0x1f3   :  { %v1520_v57 = vpop.f32.mrf.mxu3 }
 0x1f4   :  { %v1768_v47 = vmax.f32 %v1704_v22, 0.0  ;;  %v1848_v37 = vpack.c.bf16 %v1784_v44, %v1784_v44  ;;  %v1589_v0 = vadd.f32 %v1520_v57, %v1017_v2 }
 0x1f5   :  { %v1480_v45 = vpop.f32.mrf.mxu2  ;;  %v546_v59 = vpop.f32.mrf.mxu0 }
 0x1f6   :  { %v1832_v58 = vpack.c.bf16 %v1768_v47, %v1768_v47  ;;  %v1573_v62 = vadd.f32 %v1480_v45, %v977_v56  ;;  %1913 = vst.msk [vmem:[%s3581_s3 + $0xf0] sm:$0xf] %vm1852_vm2, %v1848_v37  ;;  %v1655_v30 = vmul.f32 %v3373_v52, %v1589_v0  ;;  %v979_v60 = vpop.f32.mrf.mxu1 }
 0x1f7   :  { %v980_v1 = vadd.f32 %v979_v60, %v546_v59 }
 0x1f8   :  { %1897 = vst.msk [vmem:[%s3581_s3 + $0xb0] sm:$0xf] %vm1852_vm2, %v1832_v58  ;;  %v1639_v31 = vmul.f32 %v3373_v52, %v1573_v62  ;;  %v1721_v6 = vadd.f32 %v3384_v18, %v1655_v30 }
 0x1fa   :  { %v1705_v61 = vadd.f32 %v3384_v18, %v1639_v31  ;;  %v1785_v5 = vmax.f32 %v1721_v6, 0.0 }
 0x1fb   :  { %v1523_v11 = vpop.f32.mrf.mxu3 }
 0x1fc   :  { %v1769_v7 = vmax.f32 %v1705_v61, 0.0  ;;  %v1849_v36 = vpack.c.bf16 %v1785_v5, %v1785_v5  ;;  %v1590_v54 = vadd.f32 %v1523_v11, %v1020_v4 }
 0x1fd   :  { %v1483_v21 = vpop.f32.mrf.mxu2  ;;  %v548_v10 = vpop.f32.mrf.mxu0 }
 0x1fe   :  { %v1833_v8 = vpack.c.bf16 %v1769_v7, %v1769_v7  ;;  %v1574_v13 = vadd.f32 %v1483_v21, %v980_v1  ;;  %1914 = vst.msk [vmem:[%s3581_s3 + $0xf4] sm:$0xf] %vm1852_vm2, %v1849_v36  ;;  %v1656_v14 = vmul.f32 %v3373_v52, %v1590_v54  ;;  %v981_v9 = vpop.f32.mrf.mxu1 }
 0x1ff   :  { %v982_v49 = vadd.f32 %v981_v9, %v548_v10 }
 0x200   :  { %1898 = vst.msk [vmem:[%s3581_s3 + $0xb4] sm:$0xf] %vm1852_vm2, %v1833_v8  ;;  %v1640_v48 = vmul.f32 %v3373_v52, %v1574_v13  ;;  %v1722_v33 = vadd.f32 %v3384_v18, %v1656_v14 }
 0x202   :  { %v1706_v15 = vadd.f32 %v3384_v18, %v1640_v48  ;;  %v1786_v55 = vmax.f32 %v1722_v33, 0.0 }
 0x203   :  { %v1525_v20 = vpop.f32.mrf.mxu3 }
 0x204   :  { %v1770_v12 = vmax.f32 %v1706_v15, 0.0  ;;  %v1850_v23 = vpack.c.bf16 %v1786_v55, %v1786_v55  ;;  %v1591_v27 = vadd.f32 %v1525_v20, %v1022_v16 }
 0x205   :  { %v1485_v24 = vpop.f32.mrf.mxu2 }
 0x206   :  { %v1834_v28 = vpack.c.bf16 %v1770_v12, %v1770_v12  ;;  %v1575_v3 = vadd.f32 %v1485_v24, %v982_v49  ;;  %1915 = vst.msk [vmem:[%s3581_s3 + $0xf8] sm:$0xf] %vm1852_vm2, %v1850_v23  ;;  %v1657_v25 = vmul.f32 %v3373_v52, %v1591_v27 }
 0x208   :  { %1899 = vst.msk [vmem:[%s3581_s3 + $0xb8] sm:$0xf] %vm1852_vm2, %v1834_v28  ;;  %v1641_v63 = vmul.f32 %v3373_v52, %v1575_v3  ;;  %v1723_v53 = vadd.f32 %v3384_v18, %v1657_v25 }
 0x20a   :  { %v1707_v51 = vadd.f32 %v3384_v18, %v1641_v63  ;;  %v1787_v17 = vmax.f32 %v1723_v53, 0.0 }
 0x20c   :  { %v1771_v46 = vmax.f32 %v1707_v51, 0.0  ;;  %v1851_v35 = vpack.c.bf16 %v1787_v17, %v1787_v17 }
 0x20e   :  { %v1835_v26 = vpack.c.bf16 %v1771_v46, %v1771_v46  ;;  %1916 = vst.msk [vmem:[%s3581_s3 + $0xfc] sm:$0xf] %vm1852_vm2, %v1851_v35 }
 0x210   :  { %1900 = vst.msk [vmem:[%s3581_s3 + $0xbc] sm:$0xf] %vm1852_vm2, %v1835_v26 }

</bundles_post_ra>
